<compile_context>
chip_gen: v7x
topology: tpu7x:2x2x1
jax: 0.10.0
libtpu: 0.0.40
codegen_flags: <defaults>
</compile_context>

<pallas_src>
import functools

import jax
import jax.numpy as jnp
from jax import lax
from jax.experimental import pallas as pl
from jax.experimental.pallas import tpu as pltpu
import numpy as np

_LANE = 128
_SUBLANE = 8


def _round_up(x, m):
    return ((x + m - 1) // m) * m


def _audio_gru_net_kernel(
    x_ref,        # (T, Np, F)   time-major, batch padded to a sublane group
    w_ih_ref,     # (F, 3Hp)     per-gate blocks, each 128-lane aligned
    w_hh_ref,     # (Hp, 3Hp)
    b_gx_ref,     # (1, 3Hp)     b_ih (+ b_hh for r/z gates), folded
    b_gh_ref,     # (1, 3Hp)     b_hh for the n gate only
    w_v_ref,      # (Hp, Hp)     MHA value projection (transposed, padded)
    b_v_ref,      # (1, Hp)
    w_o_ref,      # (Hp, Hp)     MHA out projection (transposed, padded)
    b_o_ref,      # (1, Hp)
    w_cls_ref,    # (Hp, Cp)     classifier (transposed, padded)
    b_cls_ref,    # (1, Cp)
    out_ref,      # (Np, Cp)     lane-dense padded logits
    gx_ref,       # VMEM scratch (T, Np, 3Hp): precomputed input projections
    *,
    hidden_pad,
):
    T, Np, F = x_ref.shape
    Hp = hidden_pad

    # ---- Hoisted input projection: ONE big matmul instead of T tiny ones. ----
    x_all = x_ref[...].reshape(T * Np, F)
    gx_all = jnp.dot(x_all, w_ih_ref[...], preferred_element_type=jnp.float32)
    gx_ref[...] = (gx_all + b_gx_ref[...]).reshape(T, Np, 3 * Hp)

    # Hoisted bias broadcast for the recurrent term (n-gate b_hh only).
    b_gh = jnp.broadcast_to(b_gh_ref[...], (Np, 3 * Hp))

    def gru_step(t, carry):
        h, acc = carry
        gx = gx_ref[t]                                           # (Np, 3Hp)
        gh = jnp.dot(h, w_hh_ref[...],
                     preferred_element_type=jnp.float32) + b_gh  # (Np, 3Hp)
        # PyTorch GRU gate ordering: [r, z, n]; slices are 128-lane aligned.
        r = jax.nn.sigmoid(gx[:, 0 * Hp:1 * Hp] + gh[:, 0 * Hp:1 * Hp])
        z = jax.nn.sigmoid(gx[:, 1 * Hp:2 * Hp] + gh[:, 1 * Hp:2 * Hp])
        n = jnp.tanh(gx[:, 2 * Hp:3 * Hp] + r * gh[:, 2 * Hp:3 * Hp])
        h_new = (1.0 - z) * n + z * h
        return h_new, acc + h_new

    h0 = jnp.zeros((Np, Hp), jnp.float32)
    # T is small and static here -> full unroll; use partial unroll (4-8) for
    # long sequences.
    _, acc = lax.fori_loop(0, T, gru_step, (h0, h0), unroll=True)
    rep = acc * (1.0 / T)                                        # temporal mean
    # Dropout after the GRU is identity in eval mode.

    # ---- Single-token self-attention (seq_len == 1). ----
    # softmax over one key/query position is exactly 1, so the attention
    # context equals the value projection; q/k projections are dropped.
    v = jnp.dot(rep, w_v_ref[...], preferred_element_type=jnp.float32) + b_v_ref[...]
    attn_out = jnp.dot(v, w_o_ref[...], preferred_element_type=jnp.float32) + b_o_ref[...]

    # classifier_dropout is identity in eval mode.
    logits = jnp.dot(attn_out, w_cls_ref[...],
                     preferred_element_type=jnp.float32) + b_cls_ref[...]
    out_ref[...] = logits.astype(out_ref.dtype)


def audio_gru_net_forward(audio, kparams, *, num_classes):
    """audio: (N, T, F) float32 -> logits (N, num_classes)."""
    N, T, F = audio.shape
    Hp = int(kparams["hidden_pad"])
    Cp = int(kparams["classes_pad"])
    Np = _round_up(N, _SUBLANE)

    # Pad batch to a full sublane group and go time-major.  XLA fuses the pad
    # and transpose into a single pre-pass over the input.
    x = jnp.pad(audio.astype(jnp.float32), ((0, Np - N), (0, 0), (0, 0)))
    x_tm = jnp.transpose(x, (1, 0, 2))                           # (T, Np, F)

    inputs = (
        x_tm,
        kparams["w_ih_t"], kparams["w_hh_t"], kparams["b_gx"], kparams["b_gh"],
        kparams["w_v_t"], kparams["b_v"],
        kparams["w_o_t"], kparams["b_o"],
        kparams["w_cls_t"], kparams["b_cls"],
    )

    kernel = functools.partial(_audio_gru_net_kernel, hidden_pad=Hp)
    vmem = pl.BlockSpec(memory_space=pltpu.MemorySpace.VMEM)

    # Everything (input, weights, gx scratch, output) is VMEM resident for one
    # invocation; size the scoped-VMEM request explicitly so large T does not
    # trip the 32 MiB default, clamped below the v7x 64 MiB physical budget.
    # TODO(synk): for realistic (long) T, stream time chunks via a grid axis
    # and split the batch across TensorCores instead of whole-array residency.
    total_bytes = 4 * (sum(int(a.size) for a in inputs)
                       + T * Np * 3 * Hp + Np * Cp)
    vmem_limit = int(min(max(2 * total_bytes, 8 << 20), 56 << 20))

    out_padded = pl.pallas_call(
        kernel,
        out_shape=jax.ShapeDtypeStruct((Np, Cp), jnp.float32),
        in_specs=[vmem] * len(inputs),
        out_specs=vmem,
        scratch_shapes=[pltpu.VMEM((T, Np, 3 * Hp), jnp.float32)],
        compiler_params=pltpu.CompilerParams(vmem_limit_bytes=vmem_limit),
    )(*inputs)
    return out_padded[:N, :num_classes]


def make_params(key, *, input_size, hidden_size, num_classes):
    """Deterministic synthetic parameters in the raw PyTorch module shapes."""
    H, F, C = hidden_size, input_size, num_classes
    D = H
    ks = jax.random.split(key, 10)
    s = 0.1

    def u(k, shape):
        return jax.random.uniform(k, shape, jnp.float32, -s, s)

    return {
        # nn.GRU: weight_ih_l0 (3H, F), weight_hh_l0 (3H, H), biases (3H,)
        "w_ih": u(ks[0], (3 * H, F)),
        "w_hh": u(ks[1], (3 * H, H)),
        "b_ih": u(ks[2], (3 * H,)),
        "b_hh": u(ks[3], (3 * H,)),
        # nn.MultiheadAttention: in_proj_weight (3D, D) = [Wq; Wk; Wv]
        "in_proj_w": u(ks[4], (3 * D, D)),
        "in_proj_b": u(ks[5], (3 * D,)),
        "w_o": u(ks[6], (D, D)),
        "b_o": u(ks[7], (D,)),
        # classifier Linear(D, C)
        "w_cls": u(ks[8], (C, D)),
        "b_cls": u(ks[9], (C,)),
    }


def prepare_kernel_params(raw, *, input_size, hidden_size, num_classes):
    """Pad / transpose / bias-fold raw params into the kernel layout."""
    H, F, C = hidden_size, input_size, num_classes
    Hp = _round_up(H, _LANE)
    Cp = _round_up(C, _LANE)

    def npf(x):
        return np.asarray(x, np.float32)

    w_ih, w_hh = npf(raw["w_ih"]), npf(raw["w_hh"])
    b_ih, b_hh = npf(raw["b_ih"]), npf(raw["b_hh"])

    # Per-gate transposed GRU weights, zero-padded so every gate block starts
    # on a 128-lane boundary.
    w_ih_t = np.zeros((F, 3 * Hp), np.float32)
    w_hh_t = np.zeros((Hp, 3 * Hp), np.float32)
    b_ih_p = np.zeros((1, 3 * Hp), np.float32)
    b_hh_p = np.zeros((1, 3 * Hp), np.float32)
    for g in range(3):
        w_ih_t[:, g * Hp:g * Hp + H] = w_ih[g * H:(g + 1) * H, :].T
        w_hh_t[:H, g * Hp:g * Hp + H] = w_hh[g * H:(g + 1) * H, :].T
        b_ih_p[0, g * Hp:g * Hp + H] = b_ih[g * H:(g + 1) * H]
        b_hh_p[0, g * Hp:g * Hp + H] = b_hh[g * H:(g + 1) * H]

    # Bias folding: r/z gates get b_ih + b_hh in the hoisted input projection;
    # the n gate keeps b_hh in the recurrent term (it is scaled by r).
    b_gx = b_ih_p.copy()
    b_gx[:, :2 * Hp] += b_hh_p[:, :2 * Hp]
    b_gh = np.zeros_like(b_hh_p)
    b_gh[:, 2 * Hp:] = b_hh_p[:, 2 * Hp:]

    in_proj_w, in_proj_b = npf(raw["in_proj_w"]), npf(raw["in_proj_b"])
    w_v, b_v = in_proj_w[2 * H:3 * H], in_proj_b[2 * H:3 * H]

    def pad_linear_t(w, b, in_dim, out_dim, in_pad, out_pad):
        wt = np.zeros((in_pad, out_pad), np.float32)
        wt[:in_dim, :out_dim] = npf(w).T
        bp = np.zeros((1, out_pad), np.float32)
        bp[0, :out_dim] = npf(b)
        return wt, bp

    w_v_t, b_v_p = pad_linear_t(w_v, b_v, H, H, Hp, Hp)
    w_o_t, b_o_p = pad_linear_t(raw["w_o"], raw["b_o"], H, H, Hp, Hp)
    w_cls_t, b_cls_p = pad_linear_t(raw["w_cls"], raw["b_cls"], H, C, Hp, Cp)

    j = jnp.asarray
    return {
        "w_ih_t": j(w_ih_t), "w_hh_t": j(w_hh_t),
        "b_gx": j(b_gx), "b_gh": j(b_gh),
        "w_v_t": j(w_v_t), "b_v": j(b_v_p),
        "w_o_t": j(w_o_t), "b_o": j(b_o_p),
        "w_cls_t": j(w_cls_t), "b_cls": j(b_cls_p),
        "hidden_pad": Hp, "classes_pad": Cp,
    }


def reference_forward(audio, raw, *, hidden_size):
    """Pure-JAX reference (PyTorch eval-mode semantics) from the raw params."""
    H = hidden_size
    w_ih_t, w_hh_t = raw["w_ih"].T, raw["w_hh"].T
    b_ih, b_hh = raw["b_ih"][None, :], raw["b_hh"][None, :]

    def step(h, x_t):
        gx = x_t @ w_ih_t + b_ih
        gh = h @ w_hh_t + b_hh
        r = jax.nn.sigmoid(gx[:, :H] + gh[:, :H])
        z = jax.nn.sigmoid(gx[:, H:2 * H] + gh[:, H:2 * H])
        n = jnp.tanh(gx[:, 2 * H:] + r * gh[:, 2 * H:])
        h_new = (1.0 - z) * n + z * h
        return h_new, h_new

    N = audio.shape[0]
    h0 = jnp.zeros((N, H), jnp.float32)
    _, hs = lax.scan(step, h0, jnp.transpose(audio, (1, 0, 2)))
    rep = jnp.mean(hs, axis=0)
    w_v = raw["in_proj_w"][2 * H:3 * H]
    b_v = raw["in_proj_b"][2 * H:3 * H]
    v = rep @ w_v.T + b_v[None, :]                 # seq_len 1 -> attn ctx == v
    attn_out = v @ raw["w_o"].T + raw["b_o"][None, :]
    return attn_out @ raw["w_cls"].T + raw["b_cls"][None, :]


if __name__ == "__main__":
    # Small shapes consistent with the module: (N, T_audio, input_size)
    N, T, F = 2, 8, 23
    H, num_heads, C = 32, 4, 2   # num_heads does not affect seq-len-1 attention

    key = jax.random.PRNGKey(0)
    k_x, k_p = jax.random.split(key)
    audio = jax.random.normal(k_x, (N, T, F), jnp.float32)
    raw_params = make_params(k_p, input_size=F, hidden_size=H, num_classes=C)
    kparams = prepare_kernel_params(raw_params, input_size=F,
                                    hidden_size=H, num_classes=C)

    logits = audio_gru_net_forward(audio, kparams, num_classes=C)
    logits = jax.block_until_ready(logits)

    ref = reference_forward(audio, raw_params, hidden_size=H)
    np.testing.assert_allclose(np.asarray(logits), np.asarray(ref),
                               rtol=1e-4, atol=1e-5)
    assert logits.shape == (N, C)
    print("KERNEL_OK")
</pallas_src>

<mosaic_0001>
module attributes {stable_mosaic.version = 11 : i64} {
  func.func @_audio_gru_net_kernel(%arg0: memref<8x8x23xf32, #tpu.memory_space<vmem>>, %arg1: memref<23x384xf32, #tpu.memory_space<vmem>>, %arg2: memref<128x384xf32, #tpu.memory_space<vmem>>, %arg3: memref<1x384xf32, #tpu.memory_space<vmem>>, %arg4: memref<1x384xf32, #tpu.memory_space<vmem>>, %arg5: memref<128x128xf32, #tpu.memory_space<vmem>>, %arg6: memref<1x128xf32, #tpu.memory_space<vmem>>, %arg7: memref<128x128xf32, #tpu.memory_space<vmem>>, %arg8: memref<1x128xf32, #tpu.memory_space<vmem>>, %arg9: memref<128x128xf32, #tpu.memory_space<vmem>>, %arg10: memref<1x128xf32, #tpu.memory_space<vmem>>, %arg11: memref<8x128xf32, #tpu.memory_space<vmem>>, %arg12: memref<8x8x384xf32, #tpu.memory_space<vmem>>) attributes {dimension_semantics = [], scalar_prefetch = 0 : i64, scratch_operands = 1 : i64, tpu.core_type = #tpu.core_type<tc>} {
    %c0 = arith.constant 0 : index
    %c0_0 = arith.constant 0 : index
    %c0_1 = arith.constant 0 : index
    %0 = vector.load %arg0[%c0, %c0_0, %c0_1] : memref<8x8x23xf32, #tpu.memory_space<vmem>>, vector<8x8x23xf32>
    %1 = vector.shape_cast %0 : vector<8x8x23xf32> to vector<64x23xf32>
    %c0_2 = arith.constant 0 : index
    %c0_3 = arith.constant 0 : index
    %2 = vector.load %arg1[%c0_2, %c0_3] : memref<23x384xf32, #tpu.memory_space<vmem>>, vector<23x384xf32>
    %cst = arith.constant dense<0.000000e+00> : vector<64x384xf32>
    %3 = tpu.matmul %1, %2, %cst {dimension_numbers = #tpu.dot_dimension_numbers<[1], [0], [0], [1], [0, 0, 1, 1], [], []>} : vector<64x23xf32>, vector<23x384xf32>, vector<64x384xf32> -> vector<64x384xf32>
    %c0_4 = arith.constant 0 : index
    %c0_5 = arith.constant 0 : index
    %4 = vector.load %arg3[%c0_4, %c0_5] : memref<1x384xf32, #tpu.memory_space<vmem>>, vector<1x384xf32>
    %5 = vector.broadcast %4 : vector<1x384xf32> to vector<64x384xf32>
    %6 = arith.addf %3, %5 : vector<64x384xf32>
    %7 = vector.shape_cast %6 : vector<64x384xf32> to vector<8x8x384xf32>
    %c0_6 = arith.constant 0 : index
    %c0_7 = arith.constant 0 : index
    %c0_8 = arith.constant 0 : index
    %8 = vector.load %arg12[%c0_6, %c0_7, %c0_8] : memref<8x8x384xf32, #tpu.memory_space<vmem>>, vector<8x8x384xf32>
    tpu.vector_store %arg12[%c0_6, %c0_7, %c0_8], %7 {strides = array<i32>} : memref<8x8x384xf32, #tpu.memory_space<vmem>>, vector<8x8x384xf32>,
    %c0_9 = arith.constant 0 : index
    %c0_10 = arith.constant 0 : index
    %9 = vector.load %arg4[%c0_9, %c0_10] : memref<1x384xf32, #tpu.memory_space<vmem>>, vector<1x384xf32>
    %10 = vector.shape_cast %9 : vector<1x384xf32> to vector<1x384xf32>
    %11 = vector.broadcast %10 : vector<1x384xf32> to vector<8x384xf32>
    %cst_11 = arith.constant 0.000000e+00 : f32
    %12 = vector.broadcast %cst_11 : f32 to vector<8x128xf32>
    %c0_i32 = arith.constant 0 : i32
    %13 = arith.index_cast %c0_i32 : i32 to index
    %c0_12 = arith.constant 0 : index
    %c0_13 = arith.constant 0 : index
    %14 = vector.load %arg12[%13, %c0_12, %c0_13] : memref<8x8x384xf32, #tpu.memory_space<vmem>>, vector<1x8x384xf32>
    %15 = vector.shape_cast %14 : vector<1x8x384xf32> to vector<8x384xf32>
    %c0_14 = arith.constant 0 : index
    %c0_15 = arith.constant 0 : index
    %16 = vector.load %arg2[%c0_14, %c0_15] : memref<128x384xf32, #tpu.memory_space<vmem>>, vector<128x384xf32>
    %cst_16 = arith.constant dense<0.000000e+00> : vector<8x384xf32>
    %17 = tpu.matmul %12, %16, %cst_16 {dimension_numbers = #tpu.dot_dimension_numbers<[1], [0], [0], [1], [0, 0, 1, 1], [], []>} : vector<8x128xf32>, vector<128x384xf32>, vector<8x384xf32> -> vector<8x384xf32>
    %18 = arith.addf %17, %11 : vector<8x384xf32>
    %19 = vector.extract_strided_slice %15 {offsets = [0, 0], sizes = [8, 128], strides = [1, 1]} : vector<8x384xf32> to vector<8x128xf32>
    %20 = vector.extract_strided_slice %18 {offsets = [0, 0], sizes = [8, 128], strides = [1, 1]} : vector<8x384xf32> to vector<8x128xf32>
    %21 = arith.addf %19, %20 : vector<8x128xf32>
    %22 = arith.negf %21 : vector<8x128xf32>
    %23 = math.exp %22 : vector<8x128xf32>
    %cst_17 = arith.constant 1.000000e+00 : f32
    %24 = vector.broadcast %cst_17 : f32 to vector<8x128xf32>
    %25 = arith.addf %24, %23 : vector<8x128xf32>
    %26 = arith.divf %24, %25 : vector<8x128xf32>
    %27 = vector.extract_strided_slice %15 {offsets = [0, 128], sizes = [8, 128], strides = [1, 1]} : vector<8x384xf32> to vector<8x128xf32>
    %28 = vector.extract_strided_slice %18 {offsets = [0, 128], sizes = [8, 128], strides = [1, 1]} : vector<8x384xf32> to vector<8x128xf32>
    %29 = arith.addf %27, %28 : vector<8x128xf32>
    %30 = arith.negf %29 : vector<8x128xf32>
    %31 = math.exp %30 : vector<8x128xf32>
    %cst_18 = arith.constant 1.000000e+00 : f32
    %32 = vector.broadcast %cst_18 : f32 to vector<8x128xf32>
    %33 = arith.addf %32, %31 : vector<8x128xf32>
    %34 = arith.divf %32, %33 : vector<8x128xf32>
    %35 = vector.extract_strided_slice %15 {offsets = [0, 256], sizes = [8, 128], strides = [1, 1]} : vector<8x384xf32> to vector<8x128xf32>
    %36 = vector.extract_strided_slice %18 {offsets = [0, 256], sizes = [8, 128], strides = [1, 1]} : vector<8x384xf32> to vector<8x128xf32>
    %37 = arith.mulf %26, %36 : vector<8x128xf32>
    %38 = arith.addf %35, %37 : vector<8x128xf32>
    %39 = math.tanh %38 : vector<8x128xf32>
    %cst_19 = arith.constant 1.000000e+00 : f32
    %40 = vector.broadcast %cst_19 : f32 to vector<8x128xf32>
    %41 = arith.subf %40, %34 : vector<8x128xf32>
    %42 = arith.mulf %41, %39 : vector<8x128xf32>
    %43 = arith.mulf %34, %12 : vector<8x128xf32>
    %44 = arith.addf %42, %43 : vector<8x128xf32>
    %45 = arith.addf %12, %44 : vector<8x128xf32>
    %c1_i32 = arith.constant 1 : i32
    %46 = arith.index_cast %c1_i32 : i32 to index
    %c0_20 = arith.constant 0 : index
    %c0_21 = arith.constant 0 : index
    %47 = vector.load %arg12[%46, %c0_20, %c0_21] : memref<8x8x384xf32, #tpu.memory_space<vmem>>, vector<1x8x384xf32>
    %48 = vector.shape_cast %47 : vector<1x8x384xf32> to vector<8x384xf32>
    %c0_22 = arith.constant 0 : index
    %c0_23 = arith.constant 0 : index
    %49 = vector.load %arg2[%c0_22, %c0_23] : memref<128x384xf32, #tpu.memory_space<vmem>>, vector<128x384xf32>
    %cst_24 = arith.constant dense<0.000000e+00> : vector<8x384xf32>
    %50 = tpu.matmul %44, %49, %cst_24 {dimension_numbers = #tpu.dot_dimension_numbers<[1], [0], [0], [1], [0, 0, 1, 1], [], []>} : vector<8x128xf32>, vector<128x384xf32>, vector<8x384xf32> -> vector<8x384xf32>
    %51 = arith.addf %50, %11 : vector<8x384xf32>
    %52 = vector.extract_strided_slice %48 {offsets = [0, 0], sizes = [8, 128], strides = [1, 1]} : vector<8x384xf32> to vector<8x128xf32>
    %53 = vector.extract_strided_slice %51 {offsets = [0, 0], sizes = [8, 128], strides = [1, 1]} : vector<8x384xf32> to vector<8x128xf32>
    %54 = arith.addf %52, %53 : vector<8x128xf32>
    %55 = arith.negf %54 : vector<8x128xf32>
    %56 = math.exp %55 : vector<8x128xf32>
    %cst_25 = arith.constant 1.000000e+00 : f32
    %57 = vector.broadcast %cst_25 : f32 to vector<8x128xf32>
    %58 = arith.addf %57, %56 : vector<8x128xf32>
    %59 = arith.divf %57, %58 : vector<8x128xf32>
    %60 = vector.extract_strided_slice %48 {offsets = [0, 128], sizes = [8, 128], strides = [1, 1]} : vector<8x384xf32> to vector<8x128xf32>
    %61 = vector.extract_strided_slice %51 {offsets = [0, 128], sizes = [8, 128], strides = [1, 1]} : vector<8x384xf32> to vector<8x128xf32>
    %62 = arith.addf %60, %61 : vector<8x128xf32>
    %63 = arith.negf %62 : vector<8x128xf32>
    %64 = math.exp %63 : vector<8x128xf32>
    %cst_26 = arith.constant 1.000000e+00 : f32
    %65 = vector.broadcast %cst_26 : f32 to vector<8x128xf32>
    %66 = arith.addf %65, %64 : vector<8x128xf32>
    %67 = arith.divf %65, %66 : vector<8x128xf32>
    %68 = vector.extract_strided_slice %48 {offsets = [0, 256], sizes = [8, 128], strides = [1, 1]} : vector<8x384xf32> to vector<8x128xf32>
    %69 = vector.extract_strided_slice %51 {offsets = [0, 256], sizes = [8, 128], strides = [1, 1]} : vector<8x384xf32> to vector<8x128xf32>
    %70 = arith.mulf %59, %69 : vector<8x128xf32>
    %71 = arith.addf %68, %70 : vector<8x128xf32>
    %72 = math.tanh %71 : vector<8x128xf32>
    %cst_27 = arith.constant 1.000000e+00 : f32
    %73 = vector.broadcast %cst_27 : f32 to vector<8x128xf32>
    %74 = arith.subf %73, %67 : vector<8x128xf32>
    %75 = arith.mulf %74, %72 : vector<8x128xf32>
    %76 = arith.mulf %67, %44 : vector<8x128xf32>
    %77 = arith.addf %75, %76 : vector<8x128xf32>
    %78 = arith.addf %45, %77 : vector<8x128xf32>
    %c2_i32 = arith.constant 2 : i32
    %79 = arith.index_cast %c2_i32 : i32 to index
    %c0_28 = arith.constant 0 : index
    %c0_29 = arith.constant 0 : index
    %80 = vector.load %arg12[%79, %c0_28, %c0_29] : memref<8x8x384xf32, #tpu.memory_space<vmem>>, vector<1x8x384xf32>
    %81 = vector.shape_cast %80 : vector<1x8x384xf32> to vector<8x384xf32>
    %c0_30 = arith.constant 0 : index
    %c0_31 = arith.constant 0 : index
    %82 = vector.load %arg2[%c0_30, %c0_31] : memref<128x384xf32, #tpu.memory_space<vmem>>, vector<128x384xf32>
    %cst_32 = arith.constant dense<0.000000e+00> : vector<8x384xf32>
    %83 = tpu.matmul %77, %82, %cst_32 {dimension_numbers = #tpu.dot_dimension_numbers<[1], [0], [0], [1], [0, 0, 1, 1], [], []>} : vector<8x128xf32>, vector<128x384xf32>, vector<8x384xf32> -> vector<8x384xf32>
    %84 = arith.addf %83, %11 : vector<8x384xf32>
    %85 = vector.extract_strided_slice %81 {offsets = [0, 0], sizes = [8, 128], strides = [1, 1]} : vector<8x384xf32> to vector<8x128xf32>
    %86 = vector.extract_strided_slice %84 {offsets = [0, 0], sizes = [8, 128], strides = [1, 1]} : vector<8x384xf32> to vector<8x128xf32>
    %87 = arith.addf %85, %86 : vector<8x128xf32>
    %88 = arith.negf %87 : vector<8x128xf32>
    %89 = math.exp %88 : vector<8x128xf32>
    %cst_33 = arith.constant 1.000000e+00 : f32
    %90 = vector.broadcast %cst_33 : f32 to vector<8x128xf32>
    %91 = arith.addf %90, %89 : vector<8x128xf32>
    %92 = arith.divf %90, %91 : vector<8x128xf32>
    %93 = vector.extract_strided_slice %81 {offsets = [0, 128], sizes = [8, 128], strides = [1, 1]} : vector<8x384xf32> to vector<8x128xf32>
    %94 = vector.extract_strided_slice %84 {offsets = [0, 128], sizes = [8, 128], strides = [1, 1]} : vector<8x384xf32> to vector<8x128xf32>
    %95 = arith.addf %93, %94 : vector<8x128xf32>
    %96 = arith.negf %95 : vector<8x128xf32>
    %97 = math.exp %96 : vector<8x128xf32>
    %cst_34 = arith.constant 1.000000e+00 : f32
    %98 = vector.broadcast %cst_34 : f32 to vector<8x128xf32>
    %99 = arith.addf %98, %97 : vector<8x128xf32>
    %100 = arith.divf %98, %99 : vector<8x128xf32>
    %101 = vector.extract_strided_slice %81 {offsets = [0, 256], sizes = [8, 128], strides = [1, 1]} : vector<8x384xf32> to vector<8x128xf32>
    %102 = vector.extract_strided_slice %84 {offsets = [0, 256], sizes = [8, 128], strides = [1, 1]} : vector<8x384xf32> to vector<8x128xf32>
    %103 = arith.mulf %92, %102 : vector<8x128xf32>
    %104 = arith.addf %101, %103 : vector<8x128xf32>
    %105 = math.tanh %104 : vector<8x128xf32>
    %cst_35 = arith.constant 1.000000e+00 : f32
    %106 = vector.broadcast %cst_35 : f32 to vector<8x128xf32>
    %107 = arith.subf %106, %100 : vector<8x128xf32>
    %108 = arith.mulf %107, %105 : vector<8x128xf32>
    %109 = arith.mulf %100, %77 : vector<8x128xf32>
    %110 = arith.addf %108, %109 : vector<8x128xf32>
    %111 = arith.addf %78, %110 : vector<8x128xf32>
    %c3_i32 = arith.constant 3 : i32
    %112 = arith.index_cast %c3_i32 : i32 to index
    %c0_36 = arith.constant 0 : index
    %c0_37 = arith.constant 0 : index
    %113 = vector.load %arg12[%112, %c0_36, %c0_37] : memref<8x8x384xf32, #tpu.memory_space<vmem>>, vector<1x8x384xf32>
    %114 = vector.shape_cast %113 : vector<1x8x384xf32> to vector<8x384xf32>
    %c0_38 = arith.constant 0 : index
    %c0_39 = arith.constant 0 : index
    %115 = vector.load %arg2[%c0_38, %c0_39] : memref<128x384xf32, #tpu.memory_space<vmem>>, vector<128x384xf32>
    %cst_40 = arith.constant dense<0.000000e+00> : vector<8x384xf32>
    %116 = tpu.matmul %110, %115, %cst_40 {dimension_numbers = #tpu.dot_dimension_numbers<[1], [0], [0], [1], [0, 0, 1, 1], [], []>} : vector<8x128xf32>, vector<128x384xf32>, vector<8x384xf32> -> vector<8x384xf32>
    %117 = arith.addf %116, %11 : vector<8x384xf32>
    %118 = vector.extract_strided_slice %114 {offsets = [0, 0], sizes = [8, 128], strides = [1, 1]} : vector<8x384xf32> to vector<8x128xf32>
    %119 = vector.extract_strided_slice %117 {offsets = [0, 0], sizes = [8, 128], strides = [1, 1]} : vector<8x384xf32> to vector<8x128xf32>
    %120 = arith.addf %118, %119 : vector<8x128xf32>
    %121 = arith.negf %120 : vector<8x128xf32>
    %122 = math.exp %121 : vector<8x128xf32>
    %cst_41 = arith.constant 1.000000e+00 : f32
    %123 = vector.broadcast %cst_41 : f32 to vector<8x128xf32>
    %124 = arith.addf %123, %122 : vector<8x128xf32>
    %125 = arith.divf %123, %124 : vector<8x128xf32>
    %126 = vector.extract_strided_slice %114 {offsets = [0, 128], sizes = [8, 128], strides = [1, 1]} : vector<8x384xf32> to vector<8x128xf32>
    %127 = vector.extract_strided_slice %117 {offsets = [0, 128], sizes = [8, 128], strides = [1, 1]} : vector<8x384xf32> to vector<8x128xf32>
    %128 = arith.addf %126, %127 : vector<8x128xf32>
    %129 = arith.negf %128 : vector<8x128xf32>
    %130 = math.exp %129 : vector<8x128xf32>
    %cst_42 = arith.constant 1.000000e+00 : f32
    %131 = vector.broadcast %cst_42 : f32 to vector<8x128xf32>
    %132 = arith.addf %131, %130 : vector<8x128xf32>
    %133 = arith.divf %131, %132 : vector<8x128xf32>
    %134 = vector.extract_strided_slice %114 {offsets = [0, 256], sizes = [8, 128], strides = [1, 1]} : vector<8x384xf32> to vector<8x128xf32>
    %135 = vector.extract_strided_slice %117 {offsets = [0, 256], sizes = [8, 128], strides = [1, 1]} : vector<8x384xf32> to vector<8x128xf32>
    %136 = arith.mulf %125, %135 : vector<8x128xf32>
    %137 = arith.addf %134, %136 : vector<8x128xf32>
    %138 = math.tanh %137 : vector<8x128xf32>
    %cst_43 = arith.constant 1.000000e+00 : f32
    %139 = vector.broadcast %cst_43 : f32 to vector<8x128xf32>
    %140 = arith.subf %139, %133 : vector<8x128xf32>
    %141 = arith.mulf %140, %138 : vector<8x128xf32>
    %142 = arith.mulf %133, %110 : vector<8x128xf32>
    %143 = arith.addf %141, %142 : vector<8x128xf32>
    %144 = arith.addf %111, %143 : vector<8x128xf32>
    %c4_i32 = arith.constant 4 : i32
    %145 = arith.index_cast %c4_i32 : i32 to index
    %c0_44 = arith.constant 0 : index
    %c0_45 = arith.constant 0 : index
    %146 = vector.load %arg12[%145, %c0_44, %c0_45] : memref<8x8x384xf32, #tpu.memory_space<vmem>>, vector<1x8x384xf32>
    %147 = vector.shape_cast %146 : vector<1x8x384xf32> to vector<8x384xf32>
    %c0_46 = arith.constant 0 : index
    %c0_47 = arith.constant 0 : index
    %148 = vector.load %arg2[%c0_46, %c0_47] : memref<128x384xf32, #tpu.memory_space<vmem>>, vector<128x384xf32>
    %cst_48 = arith.constant dense<0.000000e+00> : vector<8x384xf32>
    %149 = tpu.matmul %143, %148, %cst_48 {dimension_numbers = #tpu.dot_dimension_numbers<[1], [0], [0], [1], [0, 0, 1, 1], [], []>} : vector<8x128xf32>, vector<128x384xf32>, vector<8x384xf32> -> vector<8x384xf32>
    %150 = arith.addf %149, %11 : vector<8x384xf32>
    %151 = vector.extract_strided_slice %147 {offsets = [0, 0], sizes = [8, 128], strides = [1, 1]} : vector<8x384xf32> to vector<8x128xf32>
    %152 = vector.extract_strided_slice %150 {offsets = [0, 0], sizes = [8, 128], strides = [1, 1]} : vector<8x384xf32> to vector<8x128xf32>
    %153 = arith.addf %151, %152 : vector<8x128xf32>
    %154 = arith.negf %153 : vector<8x128xf32>
    %155 = math.exp %154 : vector<8x128xf32>
    %cst_49 = arith.constant 1.000000e+00 : f32
    %156 = vector.broadcast %cst_49 : f32 to vector<8x128xf32>
    %157 = arith.addf %156, %155 : vector<8x128xf32>
    %158 = arith.divf %156, %157 : vector<8x128xf32>
    %159 = vector.extract_strided_slice %147 {offsets = [0, 128], sizes = [8, 128], strides = [1, 1]} : vector<8x384xf32> to vector<8x128xf32>
    %160 = vector.extract_strided_slice %150 {offsets = [0, 128], sizes = [8, 128], strides = [1, 1]} : vector<8x384xf32> to vector<8x128xf32>
    %161 = arith.addf %159, %160 : vector<8x128xf32>
    %162 = arith.negf %161 : vector<8x128xf32>
    %163 = math.exp %162 : vector<8x128xf32>
    %cst_50 = arith.constant 1.000000e+00 : f32
    %164 = vector.broadcast %cst_50 : f32 to vector<8x128xf32>
    %165 = arith.addf %164, %163 : vector<8x128xf32>
    %166 = arith.divf %164, %165 : vector<8x128xf32>
    %167 = vector.extract_strided_slice %147 {offsets = [0, 256], sizes = [8, 128], strides = [1, 1]} : vector<8x384xf32> to vector<8x128xf32>
    %168 = vector.extract_strided_slice %150 {offsets = [0, 256], sizes = [8, 128], strides = [1, 1]} : vector<8x384xf32> to vector<8x128xf32>
    %169 = arith.mulf %158, %168 : vector<8x128xf32>
    %170 = arith.addf %167, %169 : vector<8x128xf32>
    %171 = math.tanh %170 : vector<8x128xf32>
    %cst_51 = arith.constant 1.000000e+00 : f32
    %172 = vector.broadcast %cst_51 : f32 to vector<8x128xf32>
    %173 = arith.subf %172, %166 : vector<8x128xf32>
    %174 = arith.mulf %173, %171 : vector<8x128xf32>
    %175 = arith.mulf %166, %143 : vector<8x128xf32>
    %176 = arith.addf %174, %175 : vector<8x128xf32>
    %177 = arith.addf %144, %176 : vector<8x128xf32>
    %c5_i32 = arith.constant 5 : i32
    %178 = arith.index_cast %c5_i32 : i32 to index
    %c0_52 = arith.constant 0 : index
    %c0_53 = arith.constant 0 : index
    %179 = vector.load %arg12[%178, %c0_52, %c0_53] : memref<8x8x384xf32, #tpu.memory_space<vmem>>, vector<1x8x384xf32>
    %180 = vector.shape_cast %179 : vector<1x8x384xf32> to vector<8x384xf32>
    %c0_54 = arith.constant 0 : index
    %c0_55 = arith.constant 0 : index
    %181 = vector.load %arg2[%c0_54, %c0_55] : memref<128x384xf32, #tpu.memory_space<vmem>>, vector<128x384xf32>
    %cst_56 = arith.constant dense<0.000000e+00> : vector<8x384xf32>
    %182 = tpu.matmul %176, %181, %cst_56 {dimension_numbers = #tpu.dot_dimension_numbers<[1], [0], [0], [1], [0, 0, 1, 1], [], []>} : vector<8x128xf32>, vector<128x384xf32>, vector<8x384xf32> -> vector<8x384xf32>
    %183 = arith.addf %182, %11 : vector<8x384xf32>
    %184 = vector.extract_strided_slice %180 {offsets = [0, 0], sizes = [8, 128], strides = [1, 1]} : vector<8x384xf32> to vector<8x128xf32>
    %185 = vector.extract_strided_slice %183 {offsets = [0, 0], sizes = [8, 128], strides = [1, 1]} : vector<8x384xf32> to vector<8x128xf32>
    %186 = arith.addf %184, %185 : vector<8x128xf32>
    %187 = arith.negf %186 : vector<8x128xf32>
    %188 = math.exp %187 : vector<8x128xf32>
    %cst_57 = arith.constant 1.000000e+00 : f32
    %189 = vector.broadcast %cst_57 : f32 to vector<8x128xf32>
    %190 = arith.addf %189, %188 : vector<8x128xf32>
    %191 = arith.divf %189, %190 : vector<8x128xf32>
    %192 = vector.extract_strided_slice %180 {offsets = [0, 128], sizes = [8, 128], strides = [1, 1]} : vector<8x384xf32> to vector<8x128xf32>
    %193 = vector.extract_strided_slice %183 {offsets = [0, 128], sizes = [8, 128], strides = [1, 1]} : vector<8x384xf32> to vector<8x128xf32>
    %194 = arith.addf %192, %193 : vector<8x128xf32>
    %195 = arith.negf %194 : vector<8x128xf32>
    %196 = math.exp %195 : vector<8x128xf32>
    %cst_58 = arith.constant 1.000000e+00 : f32
    %197 = vector.broadcast %cst_58 : f32 to vector<8x128xf32>
    %198 = arith.addf %197, %196 : vector<8x128xf32>
    %199 = arith.divf %197, %198 : vector<8x128xf32>
    %200 = vector.extract_strided_slice %180 {offsets = [0, 256], sizes = [8, 128], strides = [1, 1]} : vector<8x384xf32> to vector<8x128xf32>
    %201 = vector.extract_strided_slice %183 {offsets = [0, 256], sizes = [8, 128], strides = [1, 1]} : vector<8x384xf32> to vector<8x128xf32>
    %202 = arith.mulf %191, %201 : vector<8x128xf32>
    %203 = arith.addf %200, %202 : vector<8x128xf32>
    %204 = math.tanh %203 : vector<8x128xf32>
    %cst_59 = arith.constant 1.000000e+00 : f32
    %205 = vector.broadcast %cst_59 : f32 to vector<8x128xf32>
    %206 = arith.subf %205, %199 : vector<8x128xf32>
    %207 = arith.mulf %206, %204 : vector<8x128xf32>
    %208 = arith.mulf %199, %176 : vector<8x128xf32>
    %209 = arith.addf %207, %208 : vector<8x128xf32>
    %210 = arith.addf %177, %209 : vector<8x128xf32>
    %c6_i32 = arith.constant 6 : i32
    %211 = arith.index_cast %c6_i32 : i32 to index
    %c0_60 = arith.constant 0 : index
    %c0_61 = arith.constant 0 : index
    %212 = vector.load %arg12[%211, %c0_60, %c0_61] : memref<8x8x384xf32, #tpu.memory_space<vmem>>, vector<1x8x384xf32>
    %213 = vector.shape_cast %212 : vector<1x8x384xf32> to vector<8x384xf32>
    %c0_62 = arith.constant 0 : index
    %c0_63 = arith.constant 0 : index
    %214 = vector.load %arg2[%c0_62, %c0_63] : memref<128x384xf32, #tpu.memory_space<vmem>>, vector<128x384xf32>
    %cst_64 = arith.constant dense<0.000000e+00> : vector<8x384xf32>
    %215 = tpu.matmul %209, %214, %cst_64 {dimension_numbers = #tpu.dot_dimension_numbers<[1], [0], [0], [1], [0, 0, 1, 1], [], []>} : vector<8x128xf32>, vector<128x384xf32>, vector<8x384xf32> -> vector<8x384xf32>
    %216 = arith.addf %215, %11 : vector<8x384xf32>
    %217 = vector.extract_strided_slice %213 {offsets = [0, 0], sizes = [8, 128], strides = [1, 1]} : vector<8x384xf32> to vector<8x128xf32>
    %218 = vector.extract_strided_slice %216 {offsets = [0, 0], sizes = [8, 128], strides = [1, 1]} : vector<8x384xf32> to vector<8x128xf32>
    %219 = arith.addf %217, %218 : vector<8x128xf32>
    %220 = arith.negf %219 : vector<8x128xf32>
    %221 = math.exp %220 : vector<8x128xf32>
    %cst_65 = arith.constant 1.000000e+00 : f32
    %222 = vector.broadcast %cst_65 : f32 to vector<8x128xf32>
    %223 = arith.addf %222, %221 : vector<8x128xf32>
    %224 = arith.divf %222, %223 : vector<8x128xf32>
    %225 = vector.extract_strided_slice %213 {offsets = [0, 128], sizes = [8, 128], strides = [1, 1]} : vector<8x384xf32> to vector<8x128xf32>
    %226 = vector.extract_strided_slice %216 {offsets = [0, 128], sizes = [8, 128], strides = [1, 1]} : vector<8x384xf32> to vector<8x128xf32>
    %227 = arith.addf %225, %226 : vector<8x128xf32>
    %228 = arith.negf %227 : vector<8x128xf32>
    %229 = math.exp %228 : vector<8x128xf32>
    %cst_66 = arith.constant 1.000000e+00 : f32
    %230 = vector.broadcast %cst_66 : f32 to vector<8x128xf32>
    %231 = arith.addf %230, %229 : vector<8x128xf32>
    %232 = arith.divf %230, %231 : vector<8x128xf32>
    %233 = vector.extract_strided_slice %213 {offsets = [0, 256], sizes = [8, 128], strides = [1, 1]} : vector<8x384xf32> to vector<8x128xf32>
    %234 = vector.extract_strided_slice %216 {offsets = [0, 256], sizes = [8, 128], strides = [1, 1]} : vector<8x384xf32> to vector<8x128xf32>
    %235 = arith.mulf %224, %234 : vector<8x128xf32>
    %236 = arith.addf %233, %235 : vector<8x128xf32>
    %237 = math.tanh %236 : vector<8x128xf32>
    %cst_67 = arith.constant 1.000000e+00 : f32
    %238 = vector.broadcast %cst_67 : f32 to vector<8x128xf32>
    %239 = arith.subf %238, %232 : vector<8x128xf32>
    %240 = arith.mulf %239, %237 : vector<8x128xf32>
    %241 = arith.mulf %232, %209 : vector<8x128xf32>
    %242 = arith.addf %240, %241 : vector<8x128xf32>
    %243 = arith.addf %210, %242 : vector<8x128xf32>
    %c7_i32 = arith.constant 7 : i32
    %244 = arith.index_cast %c7_i32 : i32 to index
    %c0_68 = arith.constant 0 : index
    %c0_69 = arith.constant 0 : index
    %245 = vector.load %arg12[%244, %c0_68, %c0_69] : memref<8x8x384xf32, #tpu.memory_space<vmem>>, vector<1x8x384xf32>
    %246 = vector.shape_cast %245 : vector<1x8x384xf32> to vector<8x384xf32>
    %c0_70 = arith.constant 0 : index
    %c0_71 = arith.constant 0 : index
    %247 = vector.load %arg2[%c0_70, %c0_71] : memref<128x384xf32, #tpu.memory_space<vmem>>, vector<128x384xf32>
    %cst_72 = arith.constant dense<0.000000e+00> : vector<8x384xf32>
    %248 = tpu.matmul %242, %247, %cst_72 {dimension_numbers = #tpu.dot_dimension_numbers<[1], [0], [0], [1], [0, 0, 1, 1], [], []>} : vector<8x128xf32>, vector<128x384xf32>, vector<8x384xf32> -> vector<8x384xf32>
    %249 = arith.addf %248, %11 : vector<8x384xf32>
    %250 = vector.extract_strided_slice %246 {offsets = [0, 0], sizes = [8, 128], strides = [1, 1]} : vector<8x384xf32> to vector<8x128xf32>
    %251 = vector.extract_strided_slice %249 {offsets = [0, 0], sizes = [8, 128], strides = [1, 1]} : vector<8x384xf32> to vector<8x128xf32>
    %252 = arith.addf %250, %251 : vector<8x128xf32>
    %253 = arith.negf %252 : vector<8x128xf32>
    %254 = math.exp %253 : vector<8x128xf32>
    %cst_73 = arith.constant 1.000000e+00 : f32
    %255 = vector.broadcast %cst_73 : f32 to vector<8x128xf32>
    %256 = arith.addf %255, %254 : vector<8x128xf32>
    %257 = arith.divf %255, %256 : vector<8x128xf32>
    %258 = vector.extract_strided_slice %246 {offsets = [0, 128], sizes = [8, 128], strides = [1, 1]} : vector<8x384xf32> to vector<8x128xf32>
    %259 = vector.extract_strided_slice %249 {offsets = [0, 128], sizes = [8, 128], strides = [1, 1]} : vector<8x384xf32> to vector<8x128xf32>
    %260 = arith.addf %258, %259 : vector<8x128xf32>
    %261 = arith.negf %260 : vector<8x128xf32>
    %262 = math.exp %261 : vector<8x128xf32>
    %cst_74 = arith.constant 1.000000e+00 : f32
    %263 = vector.broadcast %cst_74 : f32 to vector<8x128xf32>
    %264 = arith.addf %263, %262 : vector<8x128xf32>
    %265 = arith.divf %263, %264 : vector<8x128xf32>
    %266 = vector.extract_strided_slice %246 {offsets = [0, 256], sizes = [8, 128], strides = [1, 1]} : vector<8x384xf32> to vector<8x128xf32>
    %267 = vector.extract_strided_slice %249 {offsets = [0, 256], sizes = [8, 128], strides = [1, 1]} : vector<8x384xf32> to vector<8x128xf32>
    %268 = arith.mulf %257, %267 : vector<8x128xf32>
    %269 = arith.addf %266, %268 : vector<8x128xf32>
    %270 = math.tanh %269 : vector<8x128xf32>
    %cst_75 = arith.constant 1.000000e+00 : f32
    %271 = vector.broadcast %cst_75 : f32 to vector<8x128xf32>
    %272 = arith.subf %271, %265 : vector<8x128xf32>
    %273 = arith.mulf %272, %270 : vector<8x128xf32>
    %274 = arith.mulf %265, %242 : vector<8x128xf32>
    %275 = arith.addf %273, %274 : vector<8x128xf32>
    %276 = arith.addf %243, %275 : vector<8x128xf32>
    %c8_i32 = arith.constant 8 : i32
    %cst_76 = arith.constant 1.250000e-01 : f32
    %277 = vector.broadcast %cst_76 : f32 to vector<8x128xf32>
    %278 = arith.mulf %276, %277 : vector<8x128xf32>
    %c0_77 = arith.constant 0 : index
    %c0_78 = arith.constant 0 : index
    %279 = vector.load %arg5[%c0_77, %c0_78] : memref<128x128xf32, #tpu.memory_space<vmem>>, vector<128x128xf32>
    %cst_79 = arith.constant dense<0.000000e+00> : vector<8x128xf32>
    %280 = tpu.matmul %278, %279, %cst_79 {dimension_numbers = #tpu.dot_dimension_numbers<[1], [0], [0], [1], [0, 0, 1, 1], [], []>} : vector<8x128xf32>, vector<128x128xf32>, vector<8x128xf32> -> vector<8x128xf32>
    %c0_80 = arith.constant 0 : index
    %c0_81 = arith.constant 0 : index
    %281 = vector.load %arg6[%c0_80, %c0_81] : memref<1x128xf32, #tpu.memory_space<vmem>>, vector<1x128xf32>
    %282 = vector.broadcast %281 : vector<1x128xf32> to vector<8x128xf32>
    %283 = arith.addf %280, %282 : vector<8x128xf32>
    %c0_82 = arith.constant 0 : index
    %c0_83 = arith.constant 0 : index
    %284 = vector.load %arg7[%c0_82, %c0_83] : memref<128x128xf32, #tpu.memory_space<vmem>>, vector<128x128xf32>
    %cst_84 = arith.constant dense<0.000000e+00> : vector<8x128xf32>
    %285 = tpu.matmul %283, %284, %cst_84 {dimension_numbers = #tpu.dot_dimension_numbers<[1], [0], [0], [1], [0, 0, 1, 1], [], []>} : vector<8x128xf32>, vector<128x128xf32>, vector<8x128xf32> -> vector<8x128xf32>
    %c0_85 = arith.constant 0 : index
    %c0_86 = arith.constant 0 : index
    %286 = vector.load %arg8[%c0_85, %c0_86] : memref<1x128xf32, #tpu.memory_space<vmem>>, vector<1x128xf32>
    %287 = vector.broadcast %286 : vector<1x128xf32> to vector<8x128xf32>
    %288 = arith.addf %285, %287 : vector<8x128xf32>
    %c0_87 = arith.constant 0 : index
    %c0_88 = arith.constant 0 : index
    %289 = vector.load %arg9[%c0_87, %c0_88] : memref<128x128xf32, #tpu.memory_space<vmem>>, vector<128x128xf32>
    %cst_89 = arith.constant dense<0.000000e+00> : vector<8x128xf32>
    %290 = tpu.matmul %288, %289, %cst_89 {dimension_numbers = #tpu.dot_dimension_numbers<[1], [0], [0], [1], [0, 0, 1, 1], [], []>} : vector<8x128xf32>, vector<128x128xf32>, vector<8x128xf32> -> vector<8x128xf32>
    %c0_90 = arith.constant 0 : index
    %c0_91 = arith.constant 0 : index
    %291 = vector.load %arg10[%c0_90, %c0_91] : memref<1x128xf32, #tpu.memory_space<vmem>>, vector<1x128xf32>
    %292 = vector.broadcast %291 : vector<1x128xf32> to vector<8x128xf32>
    %293 = arith.addf %290, %292 : vector<8x128xf32>
    %c0_92 = arith.constant 0 : index
    %c0_93 = arith.constant 0 : index
    %294 = vector.load %arg11[%c0_92, %c0_93] : memref<8x128xf32, #tpu.memory_space<vmem>>, vector<8x128xf32>
    tpu.vector_store %arg11[%c0_92, %c0_93], %293 {strides = array<i32>} : memref<8x128xf32, #tpu.memory_space<vmem>>, vector<8x128xf32>,
    return
  }
}

</mosaic_0001>

<bundles_post_ra>
// kernel: tpu_custom_call.1
= control target key start
LH: loop header
LB: loop body
LE: loop exit
PB: predicated region body
PF: predicated region fallthrough
CT: control target
= control target key end

     0   :  { %16 = vsyncpa [#allocation4], 0  ;;  %s4276_s0 = inlined_call_operand.hbm [shape: f32[8,8,23], index: 0, kind: input, shape index: {}]   ;;  %s4277_s1 = inlined_call_operand.hbm [shape: f32[23,384], index: 1, kind: input, shape index: {}]   ;;  %s4278_s2 = inlined_call_operand.hbm [shape: f32[128,384], index: 2, kind: input, shape index: {}]   ;;  %s4279_s3 = inlined_call_operand.vmem [shape: f32[1,384], index: 3, kind: input, shape index: {}]   ;;  %s4280_s4 = inlined_call_operand.vmem [shape: f32[1,384], index: 4, kind: input, shape index: {}]   ;;  %s4281_s5 = inlined_call_operand.hbm [shape: f32[128,128], index: 5, kind: input, shape index: {}]   ;;  %s4282_s6 = inlined_call_operand.vmem [shape: f32[1,128], index: 6, kind: input, shape index: {}]   ;;  %s4283_s7 = inlined_call_operand.hbm [shape: f32[128,128], index: 7, kind: input, shape index: {}]   ;;  %s4284_s8 = inlined_call_operand.vmem [shape: f32[1,128], index: 8, kind: input, shape index: {}]   ;;  %s4285_s9 = inlined_call_operand.hbm [shape: f32[128,128], index: 9, kind: input, shape index: {}]   ;;  %s4286_s10 = inlined_call_operand.vmem [shape: f32[1,128], index: 10, kind: input, shape index: {}]   ;;  %s4287_s11 = inlined_call_operand.hbm [shape: f32[8,128], index: 11, kind: output, shape index: {}]  }
   0x1   :  { %17 = vsyncpa [#allocation7], 0 }
   0x2   :  { %18 = vsyncpa [#allocation10], 0 }
   0x3   :  { %19 = vsyncpa [#allocation13], 0 }
   0x4   :  { %20 = vsyncpa [#allocation5], 0  ;;  %s3604_s17 = smov [#allocation6]   ;;  %s3440_s21 = scalar_lea.hbm %s4277_s1, 1152 }
   0x5   :  { %s38_s18 = sshll.u32 %s3604_s17, 4  ;;  %p3441_p0 = scmp.ne.s32.totalorder %s4277_s1, %s3440_s21  ;;  %s39_s18 = int_to_ptr.vmem [resolvable:$true] %s38_s18 }
   0x6   :  { %p3444_p1 = scmp.lt.u32.totalorder %s3440_s21, %s4277_s1 }
   0x8   :  { %p3446_p2 = pnand %p3444_p1, %p3441_p0 }
   0xa   :  { %3449 = shalt.err (!%p3446_p2)
}
   0xb   :  { %s3450_s26 = scalar_lea.vmem %s39_s18, 1152  ;;  %p3455_p4 = scmp.lt.s32.totalorder %s39_s18, %s39_s18 }
   0xc   :  { %p3451_p3 = scmp.ne.s32.totalorder %s39_s18, %s3450_s26  ;;  %p3456_p5 = scmp.lt.s32.totalorder %s3450_s26, %s3450_s26 }
   0xe   :  { %p3457_p6 = por %p3456_p5, %p3455_p4 }
  0x10   :  { %p3458_p7 = pnand %p3457_p6, %p3451_p3 }
  0x12   :  { %3461 = shalt.err (!%p3458_p7)
}
  0x13   :  { %s3605_s27 = smov 384   ;;  %s3606_s28 = smov 24  }
  0x14   :  { %44 = dma.hbm_to_vmem [thread:$0]  %s4277_s1, 1152, %s39_s18, [#allocation7], %s3605_s27, %s3605_s27, %s3606_s28  }
  0x15   :  { %s3607_s12 = smov [#allocation9]   ;;  %s3608_s14 = smov [#allocation3]  }
  0x16   :  { %s66_s13 = sshll.u32 %s3607_s12, 4  ;;  %s26_s15 = sshll.u32 %s3608_s14, 4  ;;  %s67_s13 = int_to_ptr.vmem [resolvable:$true] %s66_s13  ;;  %s27_s15 = int_to_ptr.vmem [resolvable:$true] %s26_s15 }
  0x17   :  { %s3462_s19 = scalar_lea.hbm %s4281_s5, 2048 }
  0x18   :  { %p3463_p8 = scmp.ne.s32.totalorder %s4281_s5, %s3462_s19  ;;  %p3466_p9 = scmp.lt.u32.totalorder %s3462_s19, %s4281_s5 }
  0x1a   :  { %p3468_p10 = pnand %p3466_p9, %p3463_p8 }
  0x1c   :  { %3471 = shalt.err (!%p3468_p10)
}
  0x1d   :  { %s3472_s1 = scalar_lea.vmem %s67_s13, 2048  ;;  %p3477_p12 = scmp.lt.s32.totalorder %s67_s13, %s67_s13 }
  0x1e   :  { %p3473_p11 = scmp.ne.s32.totalorder %s67_s13, %s3472_s1  ;;  %p3478_p13 = scmp.lt.s32.totalorder %s3472_s1, %s3472_s1 }
  0x20   :  { %p3479_p0 = por %p3478_p13, %p3477_p12 }
  0x22   :  { %p3480_p1 = pnand %p3479_p0, %p3473_p11 }
  0x24   :  { %3483 = shalt.err (!%p3480_p1)
}
  0x25   :  { %s3609_s18 = smov 128   ;;  %s3610_s24 = smov 8  }
  0x26   :  { %72 = dma.hbm_to_vmem [thread:$0]  %s4281_s5, 2048, %s67_s13, [#allocation10], %s3609_s18, %s3609_s18, %s3610_s24  }
  0x27   :  { %s3484_s12 = scalar_lea.hbm %s4276_s0, 1024 }
  0x28   :  { %p3485_p2 = scmp.ne.s32.totalorder %s4276_s0, %s3484_s12  ;;  %p3488_p3 = scmp.lt.u32.totalorder %s3484_s12, %s4276_s0 }
  0x2a   :  { %p3490_p4 = pnand %p3488_p3, %p3485_p2 }
  0x2c   :  { %3493 = shalt.err (!%p3490_p4)
}
  0x2d   :  { %s3494_s20 = scalar_lea.vmem %s27_s15, 1024  ;;  %p3499_p6 = scmp.lt.s32.totalorder %s27_s15, %s27_s15 }
  0x2e   :  { %p3495_p5 = scmp.ne.s32.totalorder %s27_s15, %s3494_s20  ;;  %p3500_p7 = scmp.lt.s32.totalorder %s3494_s20, %s3494_s20 }
  0x30   :  { %p3501_p8 = por %p3500_p7, %p3499_p6 }
  0x32   :  { %p3502_p9 = pnand %p3501_p8, %p3495_p5 }
  0x34   :  { %3505 = shalt.err (!%p3502_p9)
}
  0x35   :  { %32 = dma.hbm_to_vmem [thread:$0]  %s4276_s0, 1024, %s27_s15, [#allocation4], %s3609_s18, %s3609_s18, %s3610_s24  }
  0x36   :  { %s3611_s21 = smov [#allocation8]   ;;  %s3612_s23 = smov [#allocation11]  }
  0x37   :  { %s50_s22 = sshll.u32 %s3611_s21, 4  ;;  %s80_s1 = sshll.u32 %s3612_s23, 4  ;;  %s51_s22 = int_to_ptr.vmem [resolvable:$true] %s50_s22  ;;  %s81_s1 = int_to_ptr.vmem [resolvable:$true] %s80_s1 }
  0x38   :  { %s3506_s29 = scalar_lea.hbm %s4278_s2, 6144 }
  0x39   :  { %p3507_p10 = scmp.ne.s32.totalorder %s4278_s2, %s3506_s29  ;;  %p3510_p11 = scmp.lt.u32.totalorder %s3506_s29, %s4278_s2 }
  0x3b   :  { %p3512_p12 = pnand %p3510_p11, %p3507_p10 }
  0x3d   :  { %3515 = shalt.err (!%p3512_p12)
}
  0x3e   :  { %s3516_s0 = scalar_lea.vmem %s51_s22, 6144  ;;  %p3521_p0 = scmp.lt.s32.totalorder %s51_s22, %s51_s22 }
  0x3f   :  { %p3517_p13 = scmp.ne.s32.totalorder %s51_s22, %s3516_s0  ;;  %p3522_p1 = scmp.lt.s32.totalorder %s3516_s0, %s3516_s0 }
  0x41   :  { %p3523_p2 = por %p3522_p1, %p3521_p0 }
  0x43   :  { %p3524_p3 = pnand %p3523_p2, %p3517_p13 }
  0x45   :  { %3527 = shalt.err (!%p3524_p3)
}
  0x46   :  { %56 = dma.hbm_to_vmem [thread:$0]  %s4278_s2, 6144, %s51_s22, [#allocation7], %s3605_s27, %s3605_s27, %s3606_s28  }
  0x47   :  { %s3528_s5 = scalar_lea.hbm %s4283_s7, 2048 }
  0x48   :  { %p3529_p4 = scmp.ne.s32.totalorder %s4283_s7, %s3528_s5  ;;  %p3532_p5 = scmp.lt.u32.totalorder %s3528_s5, %s4283_s7 }
  0x4a   :  { %p3534_p6 = pnand %p3532_p5, %p3529_p4 }
  0x4c   :  { %3537 = shalt.err (!%p3534_p6)
}
  0x4d   :  { %s3538_s26 = scalar_lea.vmem %s81_s1, 2048  ;;  %p3543_p8 = scmp.lt.s32.totalorder %s81_s1, %s81_s1 }
  0x4e   :  { %p3539_p7 = scmp.ne.s32.totalorder %s81_s1, %s3538_s26  ;;  %p3544_p9 = scmp.lt.s32.totalorder %s3538_s26, %s3538_s26 }
  0x50   :  { %p3545_p10 = por %p3544_p9, %p3543_p8 }
  0x52   :  { %p3546_p11 = pnand %p3545_p10, %p3539_p7 }
  0x54   :  { %3549 = shalt.err (!%p3546_p11)
}
  0x55   :  { %86 = dma.hbm_to_vmem [thread:$0]  %s4283_s7, 2048, %s81_s1, [#allocation10], %s3609_s18, %s3609_s18, %s3610_s24  }
  0x56   :  { %s3613_s28 = smov [#allocation12]   ;;  %s3550_s12 = scalar_lea.hbm %s4285_s9, 2048 }
  0x57   :  { %s94_s22 = sshll.u32 %s3613_s28, 4  ;;  %p3551_p12 = scmp.ne.s32.totalorder %s4285_s9, %s3550_s12  ;;  %s95_s22 = int_to_ptr.vmem [resolvable:$true] %s94_s22 }
  0x58   :  { %p3554_p13 = scmp.lt.u32.totalorder %s3550_s12, %s4285_s9 }
  0x5a   :  { %p3556_p0 = pnand %p3554_p13, %p3551_p12 }
  0x5c   :  { %3559 = shalt.err (!%p3556_p0)
}
  0x5d   :  { %s3560_s17 = scalar_lea.vmem %s95_s22, 2048  ;;  %p3565_p2 = scmp.lt.s32.totalorder %s95_s22, %s95_s22 }
  0x5e   :  { %p3561_p1 = scmp.ne.s32.totalorder %s95_s22, %s3560_s17  ;;  %p3566_p3 = scmp.lt.s32.totalorder %s3560_s17, %s3560_s17 }
  0x60   :  { %p3567_p4 = por %p3566_p3, %p3565_p2 }
  0x62   :  { %p3568_p5 = pnand %p3567_p4, %p3561_p1 }
  0x64   :  { %3571 = shalt.err (!%p3568_p5)
}
  0x65   :  { %100 = dma.hbm_to_vmem [thread:$0]  %s4285_s9, 2048, %s95_s22, [#allocation13], %s3609_s18, %s3609_s18, %s3610_s24  }
  0x66   :  { %3594 = dma.done.wait [#allocation4], 1024  }
  0x67   :  { %3595 = vsyncadd [#allocation4], 4294966272 }
  0x68   :  { %3596 = dma.done.wait [#allocation7], 7296  }
  0x69   :  { %3597 = vsyncadd [#allocation7], 4294960000 }
  0x6a   :  { %3598 = dma.done.wait [#allocation10], 4096  }
  0x6b   :  { %3599 = vsyncadd [#allocation10], 4294963200 }
  0x6c   :  { %3600 = dma.done.wait [#allocation13], 2048  }
  0x6d   :  { %3601 = vsyncadd [#allocation13], 4294965248  ;;  %v3614_v0 = vmov 0.0   ;;  %v130_v1 = vld [vmem:[#allocation6 + $0x8] sm:$0xff]  ;;  %v133_v2 = vld [vmem:[#allocation6 + $0x20] sm:$0xff]  ;;  %vm180_vm0 = vcmask 1046528  }
  0x6e   :  { %254 = vmatprep.mubr.f32.mxu0 %v3614_v0  ;;  %v129_v3 = vld [vmem:[#allocation6] sm:$0xff]  ;;  %v2770_v4 = vpack.c.bf16 %v133_v2, %v130_v1  ;;  %v132_v5 = vld [vmem:[#allocation6 + $0x18] sm:$0xff]  ;;  %vm155_vm1 = vcmask 187392   ;;  %v453_v9 = vld [vmem:[#allocation8 + $0x8] sm:$0xff]  ;;  %v3615_v51 = vmov 0.0|0.0   ;;  %vm3616_vm2 = vmmov 0  }
  0x6f   :  { %v136_v6 = vld [vmem:[#allocation6 + $0x38] sm:$0x7f]  ;;  %v2772_v7 = vpack.c.bf16 %v132_v5, %v129_v3  ;;  %v121_v8 = vld [vmem:[#allocation3] sm:$0xff]  ;;  %v456_v10 = vld [vmem:[#allocation8 + $0x20] sm:$0xff] }
  0x70   :  { %2771 = vmatprep.subr.bf16.mxu0 %v2770_v4  ;;  %v452_v11 = vld [vmem:[#allocation8] sm:$0xff]  ;;  %v455_v12 = vld [vmem:[#allocation8 + $0x18] sm:$0xff]  ;;  %2373 = vmatprep.mubr.msk.f32.mxu1 %vm155_vm1, %v121_v8  ;;  %v462_v14 = vld [vmem:[#allocation8 + $0x50] sm:$0xff]  ;;  %v3771_v16 = vpack.c.bf16 %v456_v10, %v453_v9 }
  0x71   :  { %2773 = vmatpush1.bf16.msra.mxu0 %v2772_v7  ;;  %v459_v13 = vld [vmem:[#allocation8 + $0x38] sm:$0xff]  ;;  %v135_v15 = vld [vmem:[#allocation6 + $0x30] sm:$0x7f]  ;;  %v3773_v17 = vpack.c.bf16 %v455_v12, %v452_v11  ;;  %v458_v19 = vld [vmem:[#allocation8 + $0x30] sm:$0xff] }
  0x72   :  { %2131 = vmatprep.subr.msk.mxu0 %vm180_vm0, %v136_v6  ;;  %v3775_v18 = vpack.c.bf16 %v462_v14, %v459_v13  ;;  %v461_v20 = vld [vmem:[#allocation8 + $0x48] sm:$0xff]  ;;  %v468_v22 = vld [vmem:[#allocation8 + $0x80] sm:$0xff]  ;;  %v467_v28 = vld [vmem:[#allocation8 + $0x78] sm:$0xff] }
  0x73   :  { %v465_v21 = vld [vmem:[#allocation8 + $0x68] sm:$0xff]  ;;  %v122_v23 = vld [vmem:[#allocation3 + $0x8] sm:$0xff]  ;;  %v3782_v24 = vpack.c.bf16 %v461_v20, %v458_v19  ;;  %v471_v30 = vld [vmem:[#allocation8 + $0x98] sm:$0xff] }
  0x74   :  { %v131_v25 = vld [vmem:[#allocation6 + $0x10] sm:$0xff]  ;;  %v3785_v26 = vpack.c.bf16 %v468_v22, %v465_v21  ;;  %v464_v27 = vld [vmem:[#allocation8 + $0x60] sm:$0xff]  ;;  %v474_v31 = vld [vmem:[#allocation8 + $0xb0] sm:$0xff] }
  0x75   :  { %2132 = vmatpush1.msk.msra.mxu0 %vm180_vm0, %v135_v15  ;;  %v134_v29 = vld [vmem:[#allocation6 + $0x28] sm:$0xff]  ;;  %v123_v33 = vld [vmem:[#allocation3 + $0x10] sm:$0xff]  ;;  %v3790_v34 = vpack.c.bf16 %v467_v28, %v464_v27  ;;  %v137_v35 = vld [vmem:[#allocation6 + $0x40] sm:$0x7f]  ;;  %v3793_v36 = vpack.c.bf16 %v474_v31, %v471_v30 }
  0x76   :  { %2133 = vmatmul.mubr.msk.f32.vlgmr.msra.gmra.mrb[0].mxu0 %vm155_vm1, %v121_v8  ;;  %2779 = vmatprep.subr.bf16.mxu0 %v3771_v16  ;;  %v2774_v32 = vpack.c.bf16 %v134_v29, %v131_v25  ;;  %v470_v37 = vld [vmem:[#allocation8 + $0x90] sm:$0xff]  ;;  %v473_v38 = vld [vmem:[#allocation8 + $0xa8] sm:$0xff]  ;;  %v480_v40 = vld [vmem:[#allocation8 + $0xe0] sm:$0xff] }
  0x77   :  { %2781 = vmatpush1.bf16.msra.mxu0 %v3773_v17  ;;  %260 = vmatprep.mubr.f32.mxu0 %v3614_v0  ;;  %v477_v39 = vld [vmem:[#allocation8 + $0xc8] sm:$0xff]  ;;  %v454_v41 = vld [vmem:[#allocation8 + $0x10] sm:$0xff]  ;;  %v3799_v44 = vpack.c.bf16 %v473_v38, %v470_v37  ;;  %v476_v46 = vld [vmem:[#allocation8 + $0xc0] sm:$0xff]  ;;  %v140_v38 = vlaneseq }
  0x78   :  { %2783 = vmatprep.subr.bf16.mxu0 %v3775_v18  ;;  %2775 = vmatprep.subr.bf16.mxu1 %v2774_v32  ;;  %v457_v42 = vld [vmem:[#allocation8 + $0x28] sm:$0xff]  ;;  %v124_v43 = vld [vmem:[#allocation3 + $0x18] sm:$0xff]  ;;  %v3802_v45 = vpack.c.bf16 %v480_v40, %v477_v39  ;;  %v479_v47 = vld [vmem:[#allocation8 + $0xd8] sm:$0xff] }
  0x79   :  { %2777 = vmatpush3.bf16.msra.mxu1 %v2774_v32  ;;  %v483_v48 = vld [vmem:[#allocation8 + $0xf8] sm:$0xff]  ;;  %v486_v49 = vld [vmem:[#allocation8 + $0x110] sm:$0xff]  ;;  %v3805_v50 = vpack.c.bf16 %v457_v42, %v454_v41  ;;  %v460_v52 = vld [vmem:[#allocation8 + $0x40] sm:$0xff]  ;;  %v3811_v55 = vpack.c.bf16 %v479_v47, %v476_v46  ;;  %v141_v39 = vshrl.u32 %v140_v38, 7 }
  0x7a   :  { %2134 = vmatmul.mubr.msk.f32.gmra.mrb[2].mxu0 %vm155_vm1, %v122_v23  ;;  %2371 = vmatprep.subr.msk.mxu1 %vm180_vm0, %v137_v35  ;;  %v463_v53 = vld [vmem:[#allocation8 + $0x58] sm:$0xff]  ;;  %v3814_v56 = vpack.c.bf16 %v486_v49, %v483_v48  ;;  %v482_v57 = vld [vmem:[#allocation8 + $0xf0] sm:$0xff]  ;;  %v485_v58 = vld [vmem:[#allocation8 + $0x108] sm:$0xff] }
  0x7b   :  { %2785 = vmatpush1.bf16.msra.mxu0 %v3782_v24  ;;  %266 = vmatprep.mubr.f32.mxu0 %v3614_v0  ;;  %v125_v54 = vld [vmem:[#allocation3 + $0x20] sm:$0xff]  ;;  %v489_v59 = vld [vmem:[#allocation8 + $0x128] sm:$0xff]  ;;  %v492_v60 = vld [vmem:[#allocation8 + $0x140] sm:$0xff]  ;;  %v3818_v61 = vpack.c.bf16 %v463_v53, %v460_v52  ;;  %v3825_v2 = vpack.c.bf16 %v485_v58, %v482_v57  ;;  %v150_v40 = vsub.s32 2, %v141_v39 }
  0x7c   :  { %2787 = vmatprep.subr.bf16.mxu0 %v3785_v26  ;;  %v466_v62 = vld [vmem:[#allocation8 + $0x70] sm:$0xff]  ;;  %v469_v63 = vld [vmem:[#allocation8 + $0x88] sm:$0xff]  ;;  %v126_v1 = vld [vmem:[#allocation3 + $0x28] sm:$0xff]  ;;  %v3828_v3 = vpack.c.bf16 %v492_v60, %v489_v59 }
  0x7d   :  { %2372 = vmatpush3.msk.msra.mxu1 %vm180_vm0, %v137_v35  ;;  %v488_v4 = vld [vmem:[#allocation8 + $0x120] sm:$0xff]  ;;  %v491_v5 = vld [vmem:[#allocation8 + $0x138] sm:$0xff]  ;;  %v498_v7 = vld [vmem:[#allocation8 + $0x170] sm:$0xff]  ;;  %v3832_v8 = vpack.c.bf16 %v469_v63, %v466_v62  ;;  %v146_v62 = vsub.s32 1, %v141_v39 }
  0x7e   :  { %2135 = vmatmul.mubr.msk.f32.gmra.mrb[4].mxu0 %vm155_vm1, %v123_v33  ;;  %2810 = vmatprep.subr.bf16.mxu1 %v3615_v51  ;;  %v495_v6 = vld [vmem:[#allocation8 + $0x158] sm:$0xff]  ;;  %v472_v9 = vld [vmem:[#allocation8 + $0xa0] sm:$0xff]  ;;  %v127_v11 = vld [vmem:[#allocation3 + $0x30] sm:$0xff]  ;;  %v3839_v12 = vpack.c.bf16 %v491_v5, %v488_v4 }
  0x7f   :  { %2789 = vmatpush1.bf16.msra.mxu0 %v3790_v34  ;;  %272 = vmatprep.mubr.f32.mxu0 %v3614_v0  ;;  %v475_v10 = vld [vmem:[#allocation8 + $0xb8] sm:$0xff]  ;;  %v3842_v13 = vpack.c.bf16 %v498_v7, %v495_v6  ;;  %v494_v14 = vld [vmem:[#allocation8 + $0x150] sm:$0xff]  ;;  %v497_v15 = vld [vmem:[#allocation8 + $0x168] sm:$0xff] }
  0x80   :  { %2791 = vmatprep.subr.bf16.mxu0 %v3793_v36  ;;  %2374 = vmatmul.mubr.msk.f32.vlgmr.msra.gmra.mrb[0].mxu1 %vm155_vm1, %v122_v23  ;;  %v3846_v19 = vpack.c.bf16 %v475_v10, %v472_v9  ;;  %v478_v20 = vld [vmem:[#allocation8 + $0xd0] sm:$0xff]  ;;  %v481_v21 = vld [vmem:[#allocation8 + $0xe8] sm:$0xff]  ;;  %v3853_v23 = vpack.c.bf16 %v497_v15, %v494_v14  ;;  %v484_v27 = vld [vmem:[#allocation8 + $0x100] sm:$0xff] }
  0x81   :  { %2812 = vmatpush3.bf16.msra.mxu1 %v3805_v50  ;;  %2376 = vmatprep.mubr.msk.f32.mxu1 %vm155_vm1, %v123_v33  ;;  %v128_v22 = vld [vmem:[#allocation3 + $0x38] sm:$0xff]  ;;  %v3858_v25 = vpack.c.bf16 %v481_v21, %v478_v20  ;;  %v487_v28 = vld [vmem:[#allocation8 + $0x118] sm:$0xff]  ;;  %v493_v31 = vld [vmem:[#allocation8 + $0x148] sm:$0xff] }
  0x82   :  { %2136 = vmatmul.mubr.msk.f32.gmra.mrb[6].mxu0 %vm155_vm1, %v124_v43  ;;  %2813 = vmatprep.subr.bf16.mxu1 %v3615_v51  ;;  %v3868_v29 = vpack.c.bf16 %v487_v28, %v484_v27  ;;  %v490_v30 = vld [vmem:[#allocation8 + $0x130] sm:$0xff]  ;;  %v496_v33 = vld [vmem:[#allocation8 + $0x160] sm:$0xff]  ;;  %v499_v35 = vld [vmem:[#allocation8 + $0x178] sm:$0xff] }
  0x83   :  { %2793 = vmatpush1.bf16.msra.mxu0 %v3799_v44  ;;  %278 = vmatprep.mubr.f32.mxu0 %v3614_v0  ;;  %v3876_v32 = vpack.c.bf16 %v493_v31, %v490_v30  ;;  %v3882_v37 = vpack.c.bf16 %v499_v35, %v496_v33  ;;  %v138_v41 = vld [vmem:[%s4279_s3] sm:$0x7] }
  0x84   :  { %2795 = vmatprep.subr.bf16.mxu0 %v3802_v45  ;;  %2377 = vmatmul.mubr.msk.f32.gmra.mrb[2].mxu1 %vm155_vm1, %v124_v43  ;;  %v151_v42 = vrot.slane %v138_v41, %v150_v40  ;;  %v432_v57 = vld [vmem:[%s4280_s4] sm:$0x7]  ;;  %v147_v9 = vrot.slane %v138_v41, %v146_v62 }
  0x85   :  { %2815 = vmatpush3.bf16.msra.mxu1 %v3818_v61  ;;  %2379 = vmatprep.mubr.msk.f32.mxu1 %vm155_vm1, %v125_v54  ;;  %v441_v10 = vrot.slane %v432_v57, %v146_v62 }
  0x86   :  { %2137 = vmatmul.mubr.msk.f32.gmra.mrb[8].mxu0 %vm155_vm1, %v125_v54  ;;  %2816 = vmatprep.subr.bf16.mxu1 %v3615_v51  ;;  %v142_v54 = vsub.s32 0, %v141_v39  ;;  %v3944_v39 = vrot.slane %v432_v57, %v150_v40 }
  0x87   :  { %2797 = vmatpush1.bf16.msra.mxu0 %v3811_v55  ;;  %284 = vmatprep.mubr.f32.mxu0 %v3614_v0  ;;  %v3940_v20 = vadd.f32 %v441_v10, %v147_v9 }
  0x88   :  { %2799 = vmatprep.subr.bf16.mxu0 %v3814_v56  ;;  %2380 = vmatmul.mubr.msk.f32.gmra.mrb[4].mxu1 %vm155_vm1, %v126_v1  ;;  %v437_v4 = vrot.slane %v432_v57, %v142_v54 }
  0x89   :  { %2818 = vmatpush3.bf16.msra.mxu1 %v3832_v8  ;;  %2382 = vmatprep.mubr.msk.f32.mxu1 %vm155_vm1, %v127_v11 }
  0x8a   :  { %2138 = vmatmul.mubr.msk.f32.gmra.mrb[10].mxu0 %vm155_vm1, %v126_v1  ;;  %2819 = vmatprep.subr.bf16.mxu1 %v3615_v51  ;;  %v143_v1 = vrot.slane %v138_v41, %v142_v54 }
  0x8b   :  { %2801 = vmatpush1.bf16.msra.mxu0 %v3825_v2  ;;  %290 = vmatprep.mubr.f32.mxu0 %v3614_v0 }
  0x8c   :  { %2803 = vmatprep.subr.bf16.mxu0 %v3828_v3  ;;  %2383 = vmatmul.mubr.msk.f32.gmra.mrb[6].mxu1 %vm155_vm1, %v128_v22  ;;  %v3938_v14 = vadd.f32 %v437_v4, %v143_v1 }
  0x8d   :  { %2821 = vmatpush3.bf16.msra.mxu1 %v3846_v19  ;;  %2417 = vmatprep.mubr.msk.f32.mxu1 %vm3616_vm2, %v3614_v0 }
  0x8e   :  { %2139 = vmatmul.mubr.msk.f32.gmra.mrb[12].mxu0 %vm155_vm1, %v127_v11  ;;  %2822 = vmatprep.subr.bf16.mxu1 %v3615_v51 }
  0x8f   :  { %2805 = vmatpush1.bf16.msra.mxu0 %v3839_v12  ;;  %296 = vmatprep.mubr.f32.mxu0 %v3614_v0 }
  0x90   :  { %2807 = vmatprep.subr.bf16.mxu0 %v3842_v13 }
  0x91   :  { %2824 = vmatpush3.bf16.msra.mxu1 %v3858_v25 }
  0x92   :  { %2140 = vmatmul.mubr.msk.f32.gmra.mrb[14].mxu0 %vm155_vm1, %v128_v22  ;;  %2825 = vmatprep.subr.bf16.mxu1 %v3615_v51 }
  0x93   :  { %2809 = vmatpush1.bf16.msra.mxu0 %v3853_v23  ;;  %564 = vmatprep.mubr.f32.mxu0 %v3614_v0 }
  0x94   :  { %2835 = vmatprep.subr.bf16.mxu0 %v3771_v16 }
  0x95   :  { %2827 = vmatpush3.bf16.msra.mxu1 %v3868_v29 }
  0x96   :  { %565 = vmatmul.mubr.f32.vlgmr.msra.gmra.mrb[0].mxu0 %v3614_v0  ;;  %2828 = vmatprep.subr.bf16.mxu1 %v3615_v51 }
  0x97   :  { %2837 = vmatpush1.bf16.msra.mxu0 %v3773_v17  ;;  %731 = vmatprep.mubr.f32.mxu0 %v3614_v0 }
  0x98   :  { %2839 = vmatprep.subr.bf16.mxu0 %v3775_v18 }
  0x99   :  { %2830 = vmatpush3.bf16.msra.mxu1 %v3876_v32 }
  0x9a   :  { %2831 = vmatprep.subr.bf16.mxu1 %v3615_v51 }
  0x9b   :  { %2841 = vmatpush1.bf16.msra.mxu0 %v3782_v24 }
  0x9c   :  { %2843 = vmatprep.subr.bf16.mxu0 %v3785_v26 }
  0x9d   :  { %2833 = vmatpush3.bf16.msra.mxu1 %v3882_v37 }
  0x9e   :  { %2866 = vmatprep.subr.bf16.mxu1 %v3615_v51 }
  0x9f   :  { %2845 = vmatpush1.bf16.msra.mxu0 %v3790_v34 }
  0xa0   :  { %2847 = vmatprep.subr.bf16.mxu0 %v3793_v36  ;;  %2418 = vmatmul.mubr.f32.vlgmr.msra.gmra.mrb[8].mxu1 %v3614_v0 }
  0xa1   :  { %2868 = vmatpush3.bf16.msra.mxu1 %v3805_v50  ;;  %2452 = vmatprep.mubr.msk.f32.mxu1 %vm3616_vm2, %v3614_v0 }
  0xa2   :  { %2869 = vmatprep.subr.bf16.mxu1 %v3615_v51 }
  0xa3   :  { %2849 = vmatpush1.bf16.msra.mxu0 %v3799_v44 }
  0xa4   :  { %2851 = vmatprep.subr.bf16.mxu0 %v3802_v45 }
  0xa5   :  { %2871 = vmatpush3.bf16.msra.mxu1 %v3818_v61 }
  0xa6   :  { %2872 = vmatprep.subr.bf16.mxu1 %v3615_v51 }
  0xa7   :  { %2853 = vmatpush1.bf16.msra.mxu0 %v3811_v55 }
  0xa8   :  { %2855 = vmatprep.subr.bf16.mxu0 %v3814_v56 }
  0xa9   :  { %2874 = vmatpush3.bf16.msra.mxu1 %v3832_v8 }
  0xaa   :  { %2875 = vmatprep.subr.bf16.mxu1 %v3615_v51 }
  0xab   :  { %2857 = vmatpush1.bf16.msra.mxu0 %v3825_v2 }
  0xac   :  { %2859 = vmatprep.subr.bf16.mxu0 %v3828_v3 }
  0xad   :  { %2877 = vmatpush3.bf16.msra.mxu1 %v3846_v19 }
  0xae   :  { %2878 = vmatprep.subr.bf16.mxu1 %v3615_v51 }
  0xaf   :  { %2861 = vmatpush1.bf16.msra.mxu0 %v3839_v12 }
  0xb0   :  { %2863 = vmatprep.subr.bf16.mxu0 %v3842_v13 }
  0xb1   :  { %2880 = vmatpush3.bf16.msra.mxu1 %v3858_v25 }
  0xb2   :  { %2881 = vmatprep.subr.bf16.mxu1 %v3615_v51 }
  0xb3   :  { %2865 = vmatpush1.bf16.msra.mxu0 %v3853_v23 }
  0xb4   :  { %2891 = vmatprep.subr.bf16.mxu0 %v3771_v16 }
  0xb5   :  { %2883 = vmatpush3.bf16.msra.mxu1 %v3868_v29 }
  0xb6   :  { %2884 = vmatprep.subr.bf16.mxu1 %v3615_v51 }
  0xb9   :  { %2886 = vmatpush3.bf16.msra.mxu1 %v3876_v32 }
  0xba   :  { %2887 = vmatprep.subr.bf16.mxu1 %v3615_v51 }
  0xbd   :  { %2889 = vmatpush3.bf16.msra.mxu1 %v3882_v37 }
  0xbe   :  { %2922 = vmatprep.subr.bf16.mxu1 %v3615_v51 }
 0x153   :  { %v2375_v43 = vpop.f32.mrb[0].mxu1 }
 0x154   :  { %v3921_v46 = vadd.f32 %v2375_v43, %v151_v42  ;;  %v369_v47 = vpop.f32.mrb[1].mxu1 }
 0x155   :  { %v370_v54 = vadd.f32 %v369_v47, %v151_v42 }
 0x157   :  { %v2378_v48 = vpop.f32.mrb[2].mxu1 }
 0x158   :  { %v3923_v49 = vadd.f32 %v2378_v48, %v151_v42  ;;  %v379_v52 = vpop.f32.mrb[3].mxu1 }
 0x159   :  { %v3925_v53 = vadd.f32 %v379_v52, %v151_v42 }
 0x15b   :  { %v2381_v58 = vpop.f32.mrb[4].mxu1 }
 0x15c   :  { %v3930_v59 = vadd.f32 %v2381_v58, %v151_v42  ;;  %v389_v60 = vpop.f32.mrb[5].mxu1 }
 0x15d   :  { %v3932_v63 = vadd.f32 %v389_v60, %v151_v42 }
 0x15f   :  { %v2384_v5 = vpop.f32.mrb[6].mxu1 }
 0x160   :  { %v3934_v6 = vadd.f32 %v2384_v5, %v151_v42  ;;  %v399_v7 = vpop.f32.mrb[7].mxu1 }
 0x161   :  { %v3936_v11 = vadd.f32 %v399_v7, %v151_v42 }
 0x169   :  { %v566_v15 = vpop.f32.mrb[0].mxu0 }
 0x16a   :  { %v3299_v21 = vadd.f32 %v3938_v14, %v566_v15  ;;  %v568_v22 = vpop.f32.mrb[1].mxu0 }
 0x16b   :  { %v3301_v28 = vadd.f32 %v3940_v20, %v568_v22 }
 0x16c   :  { %v2150_v27 = vmul.f32 -1.442695, %v3299_v21 }
 0x16d   :  { %v2151_v30 = vmul.f32 -1.442695, %v3301_v28 }
 0x16e   :  { %3360 = vpow2.f32 %v2150_v27 }
 0x16f   :  { %3362 = vpow2.f32 %v2151_v30 }
 0x173   :  { %v637_v31 = vpop.f32.mrb[8].mxu1 }
 0x174   :  { %v2419_v35 = vpop.f32.mrb[9].mxu1  ;;  %v638_v48 = vadd.f32 %v637_v31, %v3944_v39 }
 0x178   :  { %v3361_v33 = vpop.eup %3360 }
 0x179   :  { %v645_v38 = vadd.f32 1.0, %v3361_v33  ;;  %v3363_v41 = vpop.eup %3362 }
 0x17a   :  { %v652_v43 = vadd.f32 1.0, %v3363_v41 }
 0x17b   :  { %3364 = vrcp.f32 %v645_v38 }
 0x17c   :  { %3366 = vrcp.f32 %v652_v43 }
 0x185   :  { %v3365_v52 = vpop.eup %3364 }
 0x186   :  { %v655_v58 = vmul.f32 %v3365_v52, %v638_v48  ;;  %v3367_v62 = vpop.eup %3366 }
 0x187   :  { %v658_v1 = vsub.f32 1.0, %v3367_v62  ;;  %v660_v7 = vmul.f32 0.0, %v3367_v62 }
 0x188   :  { %v656_v60 = vadd.f32 %v655_v58, %v370_v54 }
 0x18a   :  { %3368 = vtanh.f32 %v656_v60 }
 0x194   :  { %v3369_v4 = vpop.eup %3368 }
 0x195   :  { %v659_v5 = vmul.f32 %v3369_v4, %v658_v1 }
 0x197   :  { %v3947_v9 = vadd.f32 %v660_v7, %v659_v5 }
 0x199   :  { %732 = vmatmul.mubr.f32.vlgmr.msra.gmra.mrb[2].mxu0 %v3947_v9  ;;  %2453 = vmatmul.mubr.f32.vlgmr.msra.gmra.mrb[10].mxu1 %v3947_v9 }
 0x19a   :  { %2893 = vmatpush1.bf16.msra.mxu0 %v3773_v17  ;;  %2924 = vmatpush3.bf16.msra.mxu1 %v3805_v50 }
 0x19b   :  { %2895 = vmatprep.subr.bf16.mxu0 %v3775_v18  ;;  %2925 = vmatprep.subr.bf16.mxu1 %v3615_v51 }
 0x19c   :  { %898 = vmatprep.mubr.f32.mxu0 %v3614_v0  ;;  %2487 = vmatprep.mubr.msk.f32.mxu1 %vm3616_vm2, %v3614_v0 }
 0x19e   :  { %2897 = vmatpush1.bf16.msra.mxu0 %v3782_v24  ;;  %2927 = vmatpush3.bf16.msra.mxu1 %v3818_v61 }
 0x19f   :  { %2899 = vmatprep.subr.bf16.mxu0 %v3785_v26  ;;  %2928 = vmatprep.subr.bf16.mxu1 %v3615_v51 }
 0x1a2   :  { %2901 = vmatpush1.bf16.msra.mxu0 %v3790_v34  ;;  %2930 = vmatpush3.bf16.msra.mxu1 %v3832_v8 }
 0x1a3   :  { %2903 = vmatprep.subr.bf16.mxu0 %v3793_v36  ;;  %2931 = vmatprep.subr.bf16.mxu1 %v3615_v51 }
 0x1a6   :  { %2905 = vmatpush1.bf16.msra.mxu0 %v3799_v44  ;;  %2933 = vmatpush3.bf16.msra.mxu1 %v3846_v19 }
 0x1a7   :  { %2907 = vmatprep.subr.bf16.mxu0 %v3802_v45  ;;  %2934 = vmatprep.subr.bf16.mxu1 %v3615_v51 }
 0x1aa   :  { %2909 = vmatpush1.bf16.msra.mxu0 %v3811_v55  ;;  %2936 = vmatpush3.bf16.msra.mxu1 %v3858_v25 }
 0x1ab   :  { %2911 = vmatprep.subr.bf16.mxu0 %v3814_v56  ;;  %2937 = vmatprep.subr.bf16.mxu1 %v3615_v51 }
 0x1ae   :  { %2913 = vmatpush1.bf16.msra.mxu0 %v3825_v2  ;;  %2939 = vmatpush3.bf16.msra.mxu1 %v3868_v29 }
 0x1af   :  { %2915 = vmatprep.subr.bf16.mxu0 %v3828_v3  ;;  %2940 = vmatprep.subr.bf16.mxu1 %v3615_v51 }
 0x1b2   :  { %2917 = vmatpush1.bf16.msra.mxu0 %v3839_v12  ;;  %2942 = vmatpush3.bf16.msra.mxu1 %v3876_v32 }
 0x1b3   :  { %2919 = vmatprep.subr.bf16.mxu0 %v3842_v13  ;;  %2943 = vmatprep.subr.bf16.mxu1 %v3615_v51 }
 0x1b6   :  { %2921 = vmatpush1.bf16.msra.mxu0 %v3853_v23  ;;  %2945 = vmatpush3.bf16.msra.mxu1 %v3882_v37 }
 0x1b7   :  { %2947 = vmatprep.subr.bf16.mxu0 %v3771_v16  ;;  %2978 = vmatprep.subr.bf16.mxu1 %v3615_v51 }
 0x26c   :  { %v733_v40 = vpop.f32.mrb[2].mxu0  ;;  %v804_v42 = vpop.f32.mrb[10].mxu1 }
 0x26d   :  { %v3303_v47 = vadd.f32 %v3938_v14, %v733_v40  ;;  %v735_v57 = vpop.f32.mrb[3].mxu0  ;;  %v2454_v10 = vpop.f32.mrb[11].mxu1  ;;  %v805_v33 = vadd.f32 %v804_v42, %v3944_v39 }
 0x26e   :  { %v3305_v21 = vadd.f32 %v3940_v20, %v735_v57 }
 0x26f   :  { %v2152_v15 = vmul.f32 -1.442695, %v3303_v47 }
 0x270   :  { %v2153_v22 = vmul.f32 -1.442695, %v3305_v21 }
 0x271   :  { %3370 = vpow2.f32 %v2152_v15 }
 0x272   :  { %3372 = vpow2.f32 %v2153_v22 }
 0x27b   :  { %v3371_v27 = vpop.eup %3370 }
 0x27c   :  { %v812_v28 = vadd.f32 1.0, %v3371_v27  ;;  %v3373_v30 = vpop.eup %3372 }
 0x27d   :  { %v819_v31 = vadd.f32 1.0, %v3373_v30 }
 0x27e   :  { %3374 = vrcp.f32 %v812_v28 }
 0x27f   :  { %3376 = vrcp.f32 %v819_v31 }
 0x288   :  { %v3375_v35 = vpop.eup %3374 }
 0x289   :  { %v822_v38 = vmul.f32 %v3375_v35, %v805_v33  ;;  %v3377_v43 = vpop.eup %3376 }
 0x28a   :  { %v825_v48 = vsub.f32 1.0, %v3377_v43  ;;  %v827_v58 = vmul.f32 %v3377_v43, %v3947_v9 }
 0x28b   :  { %v823_v41 = vadd.f32 %v822_v38, %v3921_v46 }
 0x28d   :  { %3378 = vtanh.f32 %v823_v41 }
 0x297   :  { %v3379_v52 = vpop.eup %3378 }
 0x298   :  { %v826_v54 = vmul.f32 %v3379_v52, %v825_v48 }
 0x29a   :  { %v3991_v60 = vadd.f32 %v827_v58, %v826_v54 }
 0x29c   :  { %899 = vmatmul.mubr.f32.vlgmr.msra.gmra.mrb[4].mxu0 %v3991_v60  ;;  %2488 = vmatmul.mubr.f32.vlgmr.msra.gmra.mrb[12].mxu1 %v3991_v60 }
 0x29d   :  { %2949 = vmatpush1.bf16.msra.mxu0 %v3773_v17  ;;  %2980 = vmatpush3.bf16.msra.mxu1 %v3805_v50 }
 0x29e   :  { %2951 = vmatprep.subr.bf16.mxu0 %v3775_v18  ;;  %2981 = vmatprep.subr.bf16.mxu1 %v3615_v51 }
 0x29f   :  { %1065 = vmatprep.mubr.f32.mxu0 %v3614_v0  ;;  %2522 = vmatprep.mubr.msk.f32.mxu1 %vm3616_vm2, %v3614_v0 }
 0x2a1   :  { %2953 = vmatpush1.bf16.msra.mxu0 %v3782_v24  ;;  %2983 = vmatpush3.bf16.msra.mxu1 %v3818_v61 }
 0x2a2   :  { %2955 = vmatprep.subr.bf16.mxu0 %v3785_v26  ;;  %2984 = vmatprep.subr.bf16.mxu1 %v3615_v51 }
 0x2a5   :  { %2957 = vmatpush1.bf16.msra.mxu0 %v3790_v34  ;;  %2986 = vmatpush3.bf16.msra.mxu1 %v3832_v8 }
 0x2a6   :  { %2959 = vmatprep.subr.bf16.mxu0 %v3793_v36  ;;  %2987 = vmatprep.subr.bf16.mxu1 %v3615_v51 }
 0x2a9   :  { %2961 = vmatpush1.bf16.msra.mxu0 %v3799_v44  ;;  %2989 = vmatpush3.bf16.msra.mxu1 %v3846_v19 }
 0x2aa   :  { %2963 = vmatprep.subr.bf16.mxu0 %v3802_v45  ;;  %2990 = vmatprep.subr.bf16.mxu1 %v3615_v51 }
 0x2ad   :  { %2965 = vmatpush1.bf16.msra.mxu0 %v3811_v55  ;;  %2992 = vmatpush3.bf16.msra.mxu1 %v3858_v25 }
 0x2ae   :  { %2967 = vmatprep.subr.bf16.mxu0 %v3814_v56  ;;  %2993 = vmatprep.subr.bf16.mxu1 %v3615_v51 }
 0x2b1   :  { %2969 = vmatpush1.bf16.msra.mxu0 %v3825_v2  ;;  %2995 = vmatpush3.bf16.msra.mxu1 %v3868_v29 }
 0x2b2   :  { %2971 = vmatprep.subr.bf16.mxu0 %v3828_v3  ;;  %2996 = vmatprep.subr.bf16.mxu1 %v3615_v51 }
 0x2b5   :  { %2973 = vmatpush1.bf16.msra.mxu0 %v3839_v12  ;;  %2998 = vmatpush3.bf16.msra.mxu1 %v3876_v32 }
 0x2b6   :  { %2975 = vmatprep.subr.bf16.mxu0 %v3842_v13  ;;  %2999 = vmatprep.subr.bf16.mxu1 %v3615_v51 }
 0x2b9   :  { %2977 = vmatpush1.bf16.msra.mxu0 %v3853_v23  ;;  %3001 = vmatpush3.bf16.msra.mxu1 %v3882_v37 }
 0x2ba   :  { %3003 = vmatprep.subr.bf16.mxu0 %v3771_v16  ;;  %3034 = vmatprep.subr.bf16.mxu1 %v3615_v51 }
 0x36f   :  { %v900_v46 = vpop.f32.mrb[4].mxu0  ;;  %v971_v62 = vpop.f32.mrb[12].mxu1 }
 0x370   :  { %v3307_v1 = vadd.f32 %v3938_v14, %v900_v46  ;;  %v902_v4 = vpop.f32.mrb[5].mxu0  ;;  %v2489_v5 = vpop.f32.mrb[13].mxu1  ;;  %v972_v21 = vadd.f32 %v971_v62, %v3944_v39 }
 0x371   :  { %v3309_v40 = vadd.f32 %v3940_v20, %v902_v4 }
 0x372   :  { %v2154_v7 = vmul.f32 -1.442695, %v3307_v1 }
 0x373   :  { %v2155_v42 = vmul.f32 -1.442695, %v3309_v40 }
 0x374   :  { %3380 = vpow2.f32 %v2154_v7 }
 0x375   :  { %3382 = vpow2.f32 %v2155_v42 }
 0x37e   :  { %v3381_v47 = vpop.eup %3380 }
 0x37f   :  { %v979_v57 = vadd.f32 1.0, %v3381_v47  ;;  %v3383_v10 = vpop.eup %3382 }
 0x380   :  { %v986_v15 = vadd.f32 1.0, %v3383_v10 }
 0x381   :  { %3384 = vrcp.f32 %v979_v57 }
 0x382   :  { %3386 = vrcp.f32 %v986_v15 }
 0x38b   :  { %v3385_v22 = vpop.eup %3384 }
 0x38c   :  { %v989_v27 = vmul.f32 %v3385_v22, %v972_v21  ;;  %v3387_v30 = vpop.eup %3386 }
 0x38d   :  { %v992_v31 = vsub.f32 1.0, %v3387_v30  ;;  %v994_v38 = vmul.f32 %v3387_v30, %v3991_v60 }
 0x38e   :  { %v990_v28 = vadd.f32 %v989_v27, %v3925_v53 }
 0x390   :  { %3388 = vtanh.f32 %v990_v28 }
 0x39a   :  { %v3389_v33 = vpop.eup %3388 }
 0x39b   :  { %v993_v35 = vmul.f32 %v3389_v33, %v992_v31 }
 0x39d   :  { %v4035_v41 = vadd.f32 %v994_v38, %v993_v35 }
 0x39f   :  { %1066 = vmatmul.mubr.f32.vlgmr.msra.gmra.mrb[6].mxu0 %v4035_v41  ;;  %2523 = vmatmul.mubr.f32.vlgmr.msra.gmra.mrb[14].mxu1 %v4035_v41 }
 0x3a0   :  { %3005 = vmatpush1.bf16.msra.mxu0 %v3773_v17  ;;  %3036 = vmatpush3.bf16.msra.mxu1 %v3805_v50 }
 0x3a1   :  { %3007 = vmatprep.subr.bf16.mxu0 %v3775_v18  ;;  %3037 = vmatprep.subr.bf16.mxu1 %v3615_v51 }
 0x3a2   :  { %1232 = vmatprep.mubr.f32.mxu0 %v3614_v0  ;;  %2557 = vmatprep.mubr.msk.f32.mxu1 %vm3616_vm2, %v3614_v0 }
 0x3a4   :  { %3009 = vmatpush1.bf16.msra.mxu0 %v3782_v24  ;;  %3039 = vmatpush3.bf16.msra.mxu1 %v3818_v61 }
 0x3a5   :  { %3011 = vmatprep.subr.bf16.mxu0 %v3785_v26  ;;  %3040 = vmatprep.subr.bf16.mxu1 %v3615_v51 }
 0x3a8   :  { %3013 = vmatpush1.bf16.msra.mxu0 %v3790_v34  ;;  %3042 = vmatpush3.bf16.msra.mxu1 %v3832_v8 }
 0x3a9   :  { %3015 = vmatprep.subr.bf16.mxu0 %v3793_v36  ;;  %3043 = vmatprep.subr.bf16.mxu1 %v3615_v51 }
 0x3ac   :  { %3017 = vmatpush1.bf16.msra.mxu0 %v3799_v44  ;;  %3045 = vmatpush3.bf16.msra.mxu1 %v3846_v19 }
 0x3ad   :  { %3019 = vmatprep.subr.bf16.mxu0 %v3802_v45  ;;  %3046 = vmatprep.subr.bf16.mxu1 %v3615_v51 }
 0x3b0   :  { %3021 = vmatpush1.bf16.msra.mxu0 %v3811_v55  ;;  %3048 = vmatpush3.bf16.msra.mxu1 %v3858_v25 }
 0x3b1   :  { %3023 = vmatprep.subr.bf16.mxu0 %v3814_v56  ;;  %3049 = vmatprep.subr.bf16.mxu1 %v3615_v51 }
 0x3b4   :  { %3025 = vmatpush1.bf16.msra.mxu0 %v3825_v2  ;;  %3051 = vmatpush3.bf16.msra.mxu1 %v3868_v29 }
 0x3b5   :  { %3027 = vmatprep.subr.bf16.mxu0 %v3828_v3  ;;  %3052 = vmatprep.subr.bf16.mxu1 %v3615_v51 }
 0x3b8   :  { %3029 = vmatpush1.bf16.msra.mxu0 %v3839_v12  ;;  %3054 = vmatpush3.bf16.msra.mxu1 %v3876_v32 }
 0x3b9   :  { %3031 = vmatprep.subr.bf16.mxu0 %v3842_v13  ;;  %3055 = vmatprep.subr.bf16.mxu1 %v3615_v51 }
 0x3bc   :  { %3033 = vmatpush1.bf16.msra.mxu0 %v3853_v23  ;;  %3057 = vmatpush3.bf16.msra.mxu1 %v3882_v37 }
 0x3bd   :  { %3059 = vmatprep.subr.bf16.mxu0 %v3771_v16  ;;  %3090 = vmatprep.subr.bf16.mxu1 %v3615_v51 }
 0x472   :  { %v1067_v53 = vpop.f32.mrb[6].mxu0  ;;  %v1138_v43 = vpop.f32.mrb[14].mxu1 }
 0x473   :  { %v3311_v48 = vadd.f32 %v3938_v14, %v1067_v53  ;;  %v1069_v52 = vpop.f32.mrb[7].mxu0  ;;  %v2524_v54 = vpop.f32.mrb[15].mxu1  ;;  %v1139_v40 = vadd.f32 %v1138_v43, %v3944_v39 }
 0x474   :  { %v3313_v46 = vadd.f32 %v3940_v20, %v1069_v52 }
 0x475   :  { %v2156_v58 = vmul.f32 -1.442695, %v3311_v48 }
 0x476   :  { %v2157_v62 = vmul.f32 -1.442695, %v3313_v46 }
 0x477   :  { %3390 = vpow2.f32 %v2156_v58 }
 0x478   :  { %3392 = vpow2.f32 %v2157_v62 }
 0x481   :  { %v3391_v1 = vpop.eup %3390 }
 0x482   :  { %v1146_v4 = vadd.f32 1.0, %v3391_v1  ;;  %v3393_v5 = vpop.eup %3392 }
 0x483   :  { %v1153_v7 = vadd.f32 1.0, %v3393_v5 }
 0x484   :  { %3394 = vrcp.f32 %v1146_v4 }
 0x485   :  { %3396 = vrcp.f32 %v1153_v7 }
 0x48e   :  { %v3395_v42 = vpop.eup %3394 }
 0x48f   :  { %v1156_v47 = vmul.f32 %v3395_v42, %v1139_v40  ;;  %v3397_v10 = vpop.eup %3396 }
 0x490   :  { %v1159_v15 = vsub.f32 1.0, %v3397_v10  ;;  %v1161_v27 = vmul.f32 %v3397_v10, %v4035_v41 }
 0x491   :  { %v1157_v57 = vadd.f32 %v1156_v47, %v3923_v49 }
 0x493   :  { %3398 = vtanh.f32 %v1157_v57 }
 0x49d   :  { %v3399_v21 = vpop.eup %3398 }
 0x49e   :  { %v1160_v22 = vmul.f32 %v3399_v21, %v1159_v15 }
 0x4a0   :  { %v4079_v28 = vadd.f32 %v1161_v27, %v1160_v22 }
 0x4a2   :  { %1233 = vmatmul.mubr.f32.vlgmr.msra.gmra.mrb[8].mxu0 %v4079_v28  ;;  %2558 = vmatmul.mubr.f32.vlgmr.msra.gmra.mrb[16].mxu1 %v4079_v28 }
 0x4a3   :  { %3061 = vmatpush1.bf16.msra.mxu0 %v3773_v17  ;;  %3092 = vmatpush3.bf16.msra.mxu1 %v3805_v50 }
 0x4a4   :  { %3063 = vmatprep.subr.bf16.mxu0 %v3775_v18  ;;  %3093 = vmatprep.subr.bf16.mxu1 %v3615_v51 }
 0x4a5   :  { %1399 = vmatprep.mubr.f32.mxu0 %v3614_v0  ;;  %2592 = vmatprep.mubr.msk.f32.mxu1 %vm3616_vm2, %v3614_v0 }
 0x4a7   :  { %3065 = vmatpush1.bf16.msra.mxu0 %v3782_v24  ;;  %3095 = vmatpush3.bf16.msra.mxu1 %v3818_v61 }
 0x4a8   :  { %3067 = vmatprep.subr.bf16.mxu0 %v3785_v26  ;;  %3096 = vmatprep.subr.bf16.mxu1 %v3615_v51 }
 0x4ab   :  { %3069 = vmatpush1.bf16.msra.mxu0 %v3790_v34  ;;  %3098 = vmatpush3.bf16.msra.mxu1 %v3832_v8 }
 0x4ac   :  { %3071 = vmatprep.subr.bf16.mxu0 %v3793_v36  ;;  %3099 = vmatprep.subr.bf16.mxu1 %v3615_v51 }
 0x4af   :  { %3073 = vmatpush1.bf16.msra.mxu0 %v3799_v44  ;;  %3101 = vmatpush3.bf16.msra.mxu1 %v3846_v19 }
 0x4b0   :  { %3075 = vmatprep.subr.bf16.mxu0 %v3802_v45  ;;  %3102 = vmatprep.subr.bf16.mxu1 %v3615_v51 }
 0x4b3   :  { %3077 = vmatpush1.bf16.msra.mxu0 %v3811_v55  ;;  %3104 = vmatpush3.bf16.msra.mxu1 %v3858_v25 }
 0x4b4   :  { %3079 = vmatprep.subr.bf16.mxu0 %v3814_v56  ;;  %3105 = vmatprep.subr.bf16.mxu1 %v3615_v51 }
 0x4b7   :  { %3081 = vmatpush1.bf16.msra.mxu0 %v3825_v2  ;;  %3107 = vmatpush3.bf16.msra.mxu1 %v3868_v29 }
 0x4b8   :  { %3083 = vmatprep.subr.bf16.mxu0 %v3828_v3  ;;  %3108 = vmatprep.subr.bf16.mxu1 %v3615_v51 }
 0x4bb   :  { %3085 = vmatpush1.bf16.msra.mxu0 %v3839_v12  ;;  %3110 = vmatpush3.bf16.msra.mxu1 %v3876_v32 }
 0x4bc   :  { %3087 = vmatprep.subr.bf16.mxu0 %v3842_v13  ;;  %3111 = vmatprep.subr.bf16.mxu1 %v3615_v51 }
 0x4bf   :  { %3089 = vmatpush1.bf16.msra.mxu0 %v3853_v23  ;;  %3113 = vmatpush3.bf16.msra.mxu1 %v3882_v37 }
 0x4c0   :  { %3115 = vmatprep.subr.bf16.mxu0 %v3771_v16  ;;  %3146 = vmatprep.subr.bf16.mxu1 %v3615_v51 }
 0x575   :  { %v1234_v49 = vpop.f32.mrb[8].mxu0  ;;  %v1305_v30 = vpop.f32.mrb[16].mxu1 }
 0x576   :  { %v3315_v31 = vadd.f32 %v3938_v14, %v1234_v49  ;;  %v1236_v33 = vpop.f32.mrb[9].mxu0  ;;  %v2559_v35 = vpop.f32.mrb[17].mxu1  ;;  %v1306_v46 = vadd.f32 %v1305_v30, %v3944_v39 }
 0x577   :  { %v3317_v53 = vadd.f32 %v3940_v20, %v1236_v33 }
 0x578   :  { %v2158_v38 = vmul.f32 -1.442695, %v3315_v31 }
 0x579   :  { %v2159_v43 = vmul.f32 -1.442695, %v3317_v53 }
 0x57a   :  { %3400 = vpow2.f32 %v2158_v38 }
 0x57b   :  { %3402 = vpow2.f32 %v2159_v43 }
 0x584   :  { %v3401_v48 = vpop.eup %3400 }
 0x585   :  { %v1313_v52 = vadd.f32 1.0, %v3401_v48  ;;  %v3403_v54 = vpop.eup %3402 }
 0x586   :  { %v1320_v58 = vadd.f32 1.0, %v3403_v54 }
 0x587   :  { %3404 = vrcp.f32 %v1313_v52 }
 0x588   :  { %3406 = vrcp.f32 %v1320_v58 }
 0x591   :  { %v3405_v62 = vpop.eup %3404 }
 0x592   :  { %v1323_v1 = vmul.f32 %v3405_v62, %v1306_v46  ;;  %v3407_v5 = vpop.eup %3406 }
 0x593   :  { %v1326_v7 = vsub.f32 1.0, %v3407_v5  ;;  %v1328_v47 = vmul.f32 %v3407_v5, %v4079_v28  ;;  %v1836_v5 = vld [vmem:[#allocation9 + $0x18] sm:$0xff] }
 0x594   :  { %v1324_v4 = vadd.f32 %v1323_v1, %v3932_v63 }
 0x596   :  { %3408 = vtanh.f32 %v1324_v4  ;;  %v1835_v4 = vld [vmem:[#allocation9 + $0x10] sm:$0xff] }
 0x5a0   :  { %v3409_v40 = vpop.eup %3408 }
 0x5a1   :  { %v1327_v42 = vmul.f32 %v3409_v40, %v1326_v7  ;;  %v3230_v7 = vpack.c.bf16 %v1836_v5, %v1835_v4  ;;  %v1837_v40 = vld [vmem:[#allocation9 + $0x20] sm:$0xff] }
 0x5a3   :  { %v4123_v57 = vadd.f32 %v1328_v47, %v1327_v42  ;;  %v1838_v42 = vld [vmem:[#allocation9 + $0x28] sm:$0xff] }
 0x5a4   :  { %v3233_v47 = vpack.c.bf16 %v1838_v42, %v1837_v40 }
 0x5a5   :  { %1400 = vmatmul.mubr.f32.vlgmr.msra.gmra.mrb[10].mxu0 %v4123_v57  ;;  %2593 = vmatmul.mubr.f32.vlgmr.msra.gmra.mrb[18].mxu1 %v4123_v57 }
 0x5a6   :  { %3117 = vmatpush1.bf16.msra.mxu0 %v3773_v17  ;;  %3148 = vmatpush3.bf16.msra.mxu1 %v3805_v50 }
 0x5a7   :  { %3119 = vmatprep.subr.bf16.mxu0 %v3775_v18  ;;  %3149 = vmatprep.subr.bf16.mxu1 %v3615_v51 }
 0x5a8   :  { %1566 = vmatprep.mubr.f32.mxu0 %v3614_v0  ;;  %2627 = vmatprep.mubr.msk.f32.mxu1 %vm3616_vm2, %v3614_v0 }
 0x5aa   :  { %3121 = vmatpush1.bf16.msra.mxu0 %v3782_v24  ;;  %3151 = vmatpush3.bf16.msra.mxu1 %v3818_v61 }
 0x5ab   :  { %3123 = vmatprep.subr.bf16.mxu0 %v3785_v26  ;;  %3152 = vmatprep.subr.bf16.mxu1 %v3615_v51 }
 0x5ae   :  { %3125 = vmatpush1.bf16.msra.mxu0 %v3790_v34  ;;  %3154 = vmatpush3.bf16.msra.mxu1 %v3832_v8 }
 0x5af   :  { %3127 = vmatprep.subr.bf16.mxu0 %v3793_v36  ;;  %3155 = vmatprep.subr.bf16.mxu1 %v3615_v51 }
 0x5b2   :  { %3129 = vmatpush1.bf16.msra.mxu0 %v3799_v44  ;;  %3157 = vmatpush3.bf16.msra.mxu1 %v3846_v19 }
 0x5b3   :  { %3131 = vmatprep.subr.bf16.mxu0 %v3802_v45  ;;  %3158 = vmatprep.subr.bf16.mxu1 %v3615_v51 }
 0x5b6   :  { %3133 = vmatpush1.bf16.msra.mxu0 %v3811_v55  ;;  %3160 = vmatpush3.bf16.msra.mxu1 %v3858_v25 }
 0x5b7   :  { %3135 = vmatprep.subr.bf16.mxu0 %v3814_v56  ;;  %3161 = vmatprep.subr.bf16.mxu1 %v3615_v51 }
 0x5ba   :  { %3137 = vmatpush1.bf16.msra.mxu0 %v3825_v2  ;;  %3163 = vmatpush3.bf16.msra.mxu1 %v3868_v29 }
 0x5bb   :  { %3139 = vmatprep.subr.bf16.mxu0 %v3828_v3  ;;  %3164 = vmatprep.subr.bf16.mxu1 %v3615_v51 }
 0x5be   :  { %3141 = vmatpush1.bf16.msra.mxu0 %v3839_v12  ;;  %3166 = vmatpush3.bf16.msra.mxu1 %v3876_v32 }
 0x5bf   :  { %3143 = vmatprep.subr.bf16.mxu0 %v3842_v13  ;;  %3167 = vmatprep.subr.bf16.mxu1 %v3615_v51 }
 0x5c2   :  { %3145 = vmatpush1.bf16.msra.mxu0 %v3853_v23  ;;  %3169 = vmatpush3.bf16.msra.mxu1 %v3882_v37 }
 0x5c3   :  { %3171 = vmatprep.subr.bf16.mxu0 %v3771_v16  ;;  %3202 = vmatprep.subr.bf16.mxu1 %v3615_v51 }
 0x678   :  { %v1401_v63 = vpop.f32.mrb[10].mxu0  ;;  %v1472_v10 = vpop.f32.mrb[18].mxu1 }
 0x679   :  { %v3319_v15 = vadd.f32 %v3938_v14, %v1401_v63  ;;  %v1403_v21 = vpop.f32.mrb[11].mxu0  ;;  %v2594_v22 = vpop.f32.mrb[19].mxu1  ;;  %v1473_v16 = vadd.f32 %v1472_v10, %v3944_v39  ;;  %v1839_v63 = vld [vmem:[#allocation9 + $0x30] sm:$0xff]  ;;  %v1840_v10 = vld [vmem:[#allocation9 + $0x38] sm:$0xff] }
 0x67a   :  { %v3321_v49 = vadd.f32 %v3940_v20, %v1403_v21  ;;  %v1841_v21 = vld [vmem:[#allocation9 + $0x40] sm:$0xff]  ;;  %v1842_v22 = vld [vmem:[#allocation9 + $0x48] sm:$0xff] }
 0x67b   :  { %v2160_v27 = vmul.f32 -1.442695, %v3319_v15  ;;  %v3236_v15 = vpack.c.bf16 %v1840_v10, %v1839_v63  ;;  %v829_v63 = vadd.f32 %v3991_v60, %v3947_v9  ;;  %v1940_v9 = vld [vmem:[#allocation11 + $0x70] sm:$0xff]  ;;  %v1941_v60 = vld [vmem:[#allocation11 + $0x78] sm:$0xff] }
 0x67c   :  { %v2161_v30 = vmul.f32 -1.442695, %v3321_v49  ;;  %v1843_v49 = vld [vmem:[#allocation9 + $0x50] sm:$0xff] }
 0x67d   :  { %3410 = vpow2.f32 %v2160_v27  ;;  %v3239_v27 = vpack.c.bf16 %v1842_v22, %v1841_v21 }
 0x67e   :  { %3412 = vpow2.f32 %v2161_v30  ;;  %v1844_v30 = vld [vmem:[#allocation9 + $0x58] sm:$0xff] }
 0x687   :  { %v3411_v31 = vpop.eup %3410 }
 0x688   :  { %v1480_v33 = vadd.f32 1.0, %v3411_v31  ;;  %v3413_v35 = vpop.eup %3412  ;;  %v3242_v31 = vpack.c.bf16 %v1844_v30, %v1843_v49 }
 0x689   :  { %v1487_v38 = vadd.f32 1.0, %v3413_v35  ;;  %v1846_v35 = vld [vmem:[#allocation9 + $0x68] sm:$0xff] }
 0x68a   :  { %3414 = vrcp.f32 %v1480_v33  ;;  %v1845_v33 = vld [vmem:[#allocation9 + $0x60] sm:$0xff] }
 0x68b   :  { %3416 = vrcp.f32 %v1487_v38  ;;  %v3245_v38 = vpack.c.bf16 %v1846_v35, %v1845_v33 }
 0x694   :  { %v3415_v53 = vpop.eup %3414 }
 0x695   :  { %v1490_v43 = vmul.f32 %v3415_v53, %v1473_v16  ;;  %v3417_v52 = vpop.eup %3416  ;;  %v1847_v16 = vld [vmem:[#allocation9 + $0x70] sm:$0xff]  ;;  %v1848_v53 = vld [vmem:[#allocation9 + $0x78] sm:$0xff] }
 0x696   :  { %v1493_v54 = vsub.f32 1.0, %v3417_v52  ;;  %v1495_v62 = vmul.f32 %v3417_v52, %v4123_v57  ;;  %v1927_v52 = vld [vmem:[#allocation11 + $0x8] sm:$0xff] }
 0x697   :  { %v1491_v48 = vadd.f32 %v1490_v43, %v3930_v59  ;;  %v1834_v59 = vld [vmem:[#allocation9 + $0x8] sm:$0xff]  ;;  %v3248_v43 = vpack.c.bf16 %v1848_v53, %v1847_v16  ;;  %v2022_v16 = vld [vmem:[#allocation12 + $0x18] sm:$0xff] }
 0x699   :  { %3418 = vtanh.f32 %v1491_v48  ;;  %v1926_v48 = vld [vmem:[#allocation11] sm:$0xff] }
 0x6a3   :  { %v3419_v58 = vpop.eup %3418 }
 0x6a4   :  { %v1494_v46 = vmul.f32 %v3419_v58, %v1493_v54  ;;  %v1928_v54 = vld [vmem:[#allocation11 + $0x10] sm:$0xff]  ;;  %v3251_v58 = vpack.c.bf16 %v1927_v52, %v1926_v48  ;;  %v2026_v52 = vld [vmem:[#allocation12 + $0x38] sm:$0xff] }
 0x6a6   :  { %v4167_v1 = vadd.f32 %v1495_v62, %v1494_v46  ;;  %v1929_v46 = vld [vmem:[#allocation11 + $0x18] sm:$0xff] }
 0x6a7   :  { %v3254_v62 = vpack.c.bf16 %v1929_v46, %v1928_v54  ;;  %v2028_v46 = vld [vmem:[#allocation12 + $0x48] sm:$0xff] }
 0x6a8   :  { %1567 = vmatmul.mubr.f32.vlgmr.msra.gmra.mrb[12].mxu0 %v4167_v1  ;;  %2628 = vmatmul.mubr.f32.vlgmr.msra.gmra.mrb[20].mxu1 %v4167_v1 }
 0x6a9   :  { %3173 = vmatpush1.bf16.msra.mxu0 %v3773_v17  ;;  %3204 = vmatpush3.bf16.msra.mxu1 %v3805_v50 }
 0x6aa   :  { %3175 = vmatprep.subr.bf16.mxu0 %v3775_v18  ;;  %3205 = vmatprep.subr.bf16.mxu1 %v3615_v51 }
 0x6ab   :  { %1733 = vmatprep.mubr.f32.mxu0 %v3614_v0  ;;  %2662 = vmatprep.mubr.msk.f32.mxu1 %vm3616_vm2, %v3614_v0 }
 0x6ad   :  { %3177 = vmatpush1.bf16.msra.mxu0 %v3782_v24  ;;  %3207 = vmatpush3.bf16.msra.mxu1 %v3818_v61 }
 0x6ae   :  { %3179 = vmatprep.subr.bf16.mxu0 %v3785_v26  ;;  %3208 = vmatprep.subr.bf16.mxu1 %v3615_v51 }
 0x6b1   :  { %3181 = vmatpush1.bf16.msra.mxu0 %v3790_v34  ;;  %3210 = vmatpush3.bf16.msra.mxu1 %v3832_v8 }
 0x6b2   :  { %3183 = vmatprep.subr.bf16.mxu0 %v3793_v36  ;;  %3211 = vmatprep.subr.bf16.mxu1 %v3615_v51 }
 0x6b5   :  { %3185 = vmatpush1.bf16.msra.mxu0 %v3799_v44  ;;  %3213 = vmatpush3.bf16.msra.mxu1 %v3846_v19 }
 0x6b6   :  { %3187 = vmatprep.subr.bf16.mxu0 %v3802_v45  ;;  %3214 = vmatprep.subr.bf16.mxu1 %v3615_v51 }
 0x6b9   :  { %3189 = vmatpush1.bf16.msra.mxu0 %v3811_v55  ;;  %3216 = vmatpush3.bf16.msra.mxu1 %v3858_v25 }
 0x6ba   :  { %3191 = vmatprep.subr.bf16.mxu0 %v3814_v56  ;;  %3217 = vmatprep.subr.bf16.mxu1 %v3615_v51 }
 0x6bd   :  { %3193 = vmatpush1.bf16.msra.mxu0 %v3825_v2  ;;  %3219 = vmatpush3.bf16.msra.mxu1 %v3868_v29 }
 0x6be   :  { %3195 = vmatprep.subr.bf16.mxu0 %v3828_v3  ;;  %3220 = vmatprep.subr.bf16.mxu1 %v3615_v51 }
 0x6c1   :  { %3197 = vmatpush1.bf16.msra.mxu0 %v3839_v12  ;;  %3222 = vmatpush3.bf16.msra.mxu1 %v3876_v32 }
 0x6c2   :  { %3199 = vmatprep.subr.bf16.mxu0 %v3842_v13  ;;  %3223 = vmatprep.subr.bf16.mxu1 %v3615_v51 }
 0x6c5   :  { %3201 = vmatpush1.bf16.msra.mxu0 %v3853_v23  ;;  %3225 = vmatpush3.bf16.msra.mxu1 %v3882_v37  ;;  %v1833_v37 = vld [vmem:[#allocation9] sm:$0xff] }
 0x6c6   :  { %3226 = vmatprep.subr.bf16.mxu0 %v3615_v51  ;;  %3250 = vmatprep.subr.bf16.mxu1 %v3615_v51 }
 0x77b   :  { %v1568_v17 = vpop.f32.mrb[12].mxu0  ;;  %v1639_v18 = vpop.f32.mrb[20].mxu1 }
 0x77c   :  { %v3323_v24 = vadd.f32 %v3938_v14, %v1568_v17  ;;  %v1570_v26 = vpop.f32.mrb[13].mxu0  ;;  %v2629_v34 = vpop.f32.mrb[21].mxu1  ;;  %v1640_v2 = vadd.f32 %v1639_v18, %v3944_v39  ;;  %v1930_v17 = vld [vmem:[#allocation11 + $0x20] sm:$0xff]  ;;  %v1931_v18 = vld [vmem:[#allocation11 + $0x28] sm:$0xff] }
 0x77d   :  { %v3325_v44 = vadd.f32 %v3940_v20, %v1570_v26  ;;  %v1932_v26 = vld [vmem:[#allocation11 + $0x30] sm:$0xff]  ;;  %v1933_v34 = vld [vmem:[#allocation11 + $0x38] sm:$0xff] }
 0x77e   :  { %v2162_v36 = vmul.f32 -1.442695, %v3323_v24  ;;  %v3257_v24 = vpack.c.bf16 %v1931_v18, %v1930_v17  ;;  %v2029_v17 = vld [vmem:[#allocation12 + $0x50] sm:$0xff]  ;;  %v2030_v18 = vld [vmem:[#allocation12 + $0x58] sm:$0xff] }
 0x77f   :  { %v2163_v45 = vmul.f32 -1.442695, %v3325_v44  ;;  %v1934_v44 = vld [vmem:[#allocation11 + $0x40] sm:$0xff] }
 0x780   :  { %3420 = vpow2.f32 %v2162_v36  ;;  %v3260_v36 = vpack.c.bf16 %v1933_v34, %v1932_v26  ;;  %v2031_v26 = vld [vmem:[#allocation12 + $0x60] sm:$0xff]  ;;  %v2032_v34 = vld [vmem:[#allocation12 + $0x68] sm:$0xff] }
 0x781   :  { %3422 = vpow2.f32 %v2163_v45  ;;  %v1935_v45 = vld [vmem:[#allocation11 + $0x48] sm:$0xff] }
 0x78a   :  { %v3421_v50 = vpop.eup %3420 }
 0x78b   :  { %v1647_v55 = vadd.f32 1.0, %v3421_v50  ;;  %v3423_v56 = vpop.eup %3422  ;;  %v3263_v50 = vpack.c.bf16 %v1935_v45, %v1934_v44  ;;  %v2166_v44 = vld [vmem:[%s4282_s6] ss:$0 sm:$0xff]  ;;  %s3617_s6 = smov [#allocation14]  }
 0x78c   :  { %v1654_v61 = vadd.f32 1.0, %v3423_v56  ;;  %v1937_v56 = vld [vmem:[#allocation11 + $0x58] sm:$0xff]  ;;  %s2119_s23 = sshll.u32 %s3617_s6, 4  ;;  %s2120_s23 = int_to_ptr.vmem [resolvable:$true] %s2119_s23 }
 0x78d   :  { %3424 = vrcp.f32 %v1647_v55  ;;  %v1936_v55 = vld [vmem:[#allocation11 + $0x50] sm:$0xff]  ;;  %s3572_s25 = scalar_lea.vmem %s2120_s23, 128  ;;  %p3577_p7 = scmp.lt.s32.totalorder %s2120_s23, %s2120_s23 }
 0x78e   :  { %3426 = vrcp.f32 %v1654_v61  ;;  %v3266_v61 = vpack.c.bf16 %v1937_v56, %v1936_v55  ;;  %v2033_v56 = vld [vmem:[#allocation12 + $0x70] sm:$0xff]  ;;  %p3573_p6 = scmp.ne.s32.totalorder %s2120_s23, %s3572_s25  ;;  %p3578_p8 = scmp.lt.s32.totalorder %s3572_s25, %s3572_s25 }
 0x790   :  { %p3579_p9 = por %p3578_p8, %p3577_p7 }
 0x792   :  { %p3580_p10 = pnand %p3579_p9, %p3573_p6 }
 0x797   :  { %v3425_v3 = vpop.eup %3424 }
 0x798   :  { %v1657_v8 = vmul.f32 %v3425_v3, %v1640_v2  ;;  %v3427_v13 = vpop.eup %3426  ;;  %v1938_v2 = vld [vmem:[#allocation11 + $0x60] sm:$0xff]  ;;  %v1939_v3 = vld [vmem:[#allocation11 + $0x68] sm:$0xff] }
 0x799   :  { %v1660_v19 = vsub.f32 1.0, %v3427_v13  ;;  %v1662_v29 = vmul.f32 %v3427_v13, %v4167_v1 }
 0x79a   :  { %v1658_v12 = vadd.f32 %v1657_v8, %v3936_v11  ;;  %v3227_v11 = vpack.c.bf16 %v1834_v59, %v1833_v37  ;;  %v3269_v8 = vpack.c.bf16 %v1939_v3, %v1938_v2  ;;  %v2167_v3 = vld [vmem:[%s4284_s8] ss:$0 sm:$0xff] }
 0x79c   :  { %3428 = vtanh.f32 %v1658_v12 }
 0x7a6   :  { %v3429_v23 = vpop.eup %3428 }
 0x7a7   :  { %v1661_v25 = vmul.f32 %v3429_v23, %v1660_v19 }
 0x7a9   :  { %v4211_v32 = vadd.f32 %v1662_v29, %v1661_v25 }
 0x7ab   :  { %1734 = vmatmul.mubr.f32.vlgmr.msra.gmra.mrb[14].mxu0 %v4211_v32  ;;  %2663 = vmatmul.mubr.f32.vlgmr.msra.gmra.mrb[22].mxu1 %v4211_v32 }
 0x7ac   :  { %2697 = vmatprep.mubr.msk.f32.mxu0 %vm3616_vm2, %v3614_v0  ;;  %2732 = vmatprep.mubr.msk.f32.mxu1 %vm3616_vm2, %v3614_v0 }
 0x7ad   :  { %3228 = vmatpush3.bf16.msra.mxu0 %v3227_v11  ;;  %3252 = vmatpush3.bf16.msra.mxu1 %v3251_v58  ;;  %v2027_v58 = vld [vmem:[#allocation12 + $0x40] sm:$0xff] }
 0x7ae   :  { %3229 = vmatprep.subr.bf16.mxu0 %v3615_v51  ;;  %3253 = vmatprep.subr.bf16.mxu1 %v3615_v51 }
 0x7b1   :  { %3231 = vmatpush3.bf16.msra.mxu0 %v3230_v7  ;;  %3255 = vmatpush3.bf16.msra.mxu1 %v3254_v62  ;;  %v3287_v62 = vpack.c.bf16 %v2028_v46, %v2027_v58 }
 0x7b2   :  { %3232 = vmatprep.subr.bf16.mxu0 %v3615_v51  ;;  %3256 = vmatprep.subr.bf16.mxu1 %v3615_v51 }
 0x7b5   :  { %3234 = vmatpush3.bf16.msra.mxu0 %v3233_v47  ;;  %3258 = vmatpush3.bf16.msra.mxu1 %v3257_v24  ;;  %v3290_v24 = vpack.c.bf16 %v2030_v18, %v2029_v17 }
 0x7b6   :  { %3235 = vmatprep.subr.bf16.mxu0 %v3615_v51  ;;  %3259 = vmatprep.subr.bf16.mxu1 %v3615_v51 }
 0x7b9   :  { %3237 = vmatpush3.bf16.msra.mxu0 %v3236_v15  ;;  %3261 = vmatpush3.bf16.msra.mxu1 %v3260_v36  ;;  %v3293_v36 = vpack.c.bf16 %v2032_v34, %v2031_v26 }
 0x7ba   :  { %3238 = vmatprep.subr.bf16.mxu0 %v3615_v51  ;;  %3262 = vmatprep.subr.bf16.mxu1 %v3615_v51 }
 0x7bd   :  { %3240 = vmatpush3.bf16.msra.mxu0 %v3239_v27  ;;  %3264 = vmatpush3.bf16.msra.mxu1 %v3263_v50 }
 0x7be   :  { %3241 = vmatprep.subr.bf16.mxu0 %v3615_v51  ;;  %3265 = vmatprep.subr.bf16.mxu1 %v3615_v51 }
 0x7c1   :  { %3243 = vmatpush3.bf16.msra.mxu0 %v3242_v31  ;;  %3267 = vmatpush3.bf16.msra.mxu1 %v3266_v61  ;;  %v2034_v61 = vld [vmem:[#allocation12 + $0x78] sm:$0xff] }
 0x7c2   :  { %3244 = vmatprep.subr.bf16.mxu0 %v3615_v51  ;;  %3268 = vmatprep.subr.bf16.mxu1 %v3615_v51  ;;  %v3296_v2 = vpack.c.bf16 %v2034_v61, %v2033_v56 }
 0x7c5   :  { %3246 = vmatpush3.bf16.msra.mxu0 %v3245_v38  ;;  %3270 = vmatpush3.bf16.msra.mxu1 %v3269_v8  ;;  %v2021_v38 = vld [vmem:[#allocation12 + $0x10] sm:$0xff] }
 0x7c6   :  { %3247 = vmatprep.subr.bf16.mxu0 %v3615_v51  ;;  %3271 = vmatprep.subr.bf16.mxu1 %v3615_v51  ;;  %v3278_v53 = vpack.c.bf16 %v2022_v16, %v2021_v38 }
 0x7c9   :  { %3249 = vmatpush3.bf16.msra.mxu0 %v3248_v43  ;;  %v2024_v43 = vld [vmem:[#allocation12 + $0x28] sm:$0xff] }
 0x7ca   :  { %3274 = vmatprep.subr.bf16.mxu0 %v3615_v51 }
 0x87e   :  { %v1735_v12 = vpop.f32.mrb[14].mxu0  ;;  %v1806_v13 = vpop.f32.mrb[22].mxu1 }
 0x87f   :  { %v3327_v19 = vadd.f32 %v3938_v14, %v1735_v12  ;;  %v1737_v23 = vpop.f32.mrb[15].mxu0  ;;  %v2664_v25 = vpop.f32.mrb[23].mxu1  ;;  %v1807_v40 = vadd.f32 %v1806_v13, %v3944_v39 }
 0x880   :  { %v3329_v37 = vadd.f32 %v3940_v20, %v1737_v23  ;;  %v996_v20 = vadd.f32 %v4035_v41, %v829_v63  ;;  %v3272_v41 = vpack.c.bf16 %v1941_v60, %v1940_v9 }
 0x881   :  { %v2164_v29 = vmul.f32 -1.442695, %v3327_v19 }
 0x882   :  { %v2165_v59 = vmul.f32 -1.442695, %v3329_v37  ;;  %v1163_v15 = vadd.f32 %v4079_v28, %v996_v20  ;;  %3273 = vmatpush3.bf16.msra.mxu1 %v3272_v41  ;;  %v2019_v28 = vld [vmem:[#allocation12] sm:$0xff] }
 0x883   :  { %3430 = vpow2.f32 %v2164_v29 }
 0x884   :  { %3432 = vpow2.f32 %v2165_v59  ;;  %v1330_v21 = vadd.f32 %v4123_v57, %v1163_v15  ;;  %v2020_v57 = vld [vmem:[#allocation12 + $0x8] sm:$0xff] }
 0x886   :  { %v1497_v39 = vadd.f32 %v4167_v1, %v1330_v21  ;;  %v3275_v1 = vpack.c.bf16 %v2020_v57, %v2019_v28 }
 0x88d   :  { %v3431_v11 = vpop.eup %3430 }
 0x88e   :  { %v1814_v4 = vadd.f32 1.0, %v3431_v11  ;;  %v3433_v5 = vpop.eup %3432 }
 0x88f   :  { %v1821_v7 = vadd.f32 1.0, %v3433_v5 }
 0x890   :  { %3434 = vrcp.f32 %v1814_v4 }
 0x891   :  { %3436 = vrcp.f32 %v1821_v7 }
 0x89a   :  { %v3435_v42 = vpop.eup %3434 }
 0x89b   :  { %v1824_v47 = vmul.f32 %v3435_v42, %v1807_v40  ;;  %v3437_v10 = vpop.eup %3436 }
 0x89c   :  { %v1827_v22 = vsub.f32 1.0, %v3437_v10  ;;  %v1829_v30 = vmul.f32 %v3437_v10, %v4211_v32 }
 0x89d   :  { %v1825_v14 = vadd.f32 %v1824_v47, %v3934_v6  ;;  %v1664_v6 = vadd.f32 %v4211_v32, %v1497_v39  ;;  %v2023_v32 = vld [vmem:[#allocation12 + $0x20] sm:$0xff] }
 0x89e   :  { %v3281_v48 = vpack.c.bf16 %v2024_v43, %v2023_v32 }
 0x89f   :  { %3438 = vtanh.f32 %v1825_v14 }
 0x8a9   :  { %v3439_v27 = vpop.eup %3438 }
 0x8aa   :  { %v1828_v49 = vmul.f32 %v3439_v27, %v1827_v22 }
 0x8ac   :  { %v1830_v31 = vadd.f32 %v1829_v30, %v1828_v49 }
 0x8ae   :  { %v1831_v33 = vadd.f32 %v1830_v31, %v1664_v6 }
 0x8b0   :  { %v1832_v35 = vmul.f32 0.125, %v1831_v33 }
 0x8b2   :  { %2698 = vmatmul.mubr.f32.vlgmr.msra.gmra.mrb[16].mxu0 %v1832_v35 }
 0x8b3   :  { %2767 = vmatprep.mubr.msk.f32.mxu0 %vm3616_vm2, %v3614_v0  ;;  %3276 = vmatpush3.bf16.msra.mxu0 %v3275_v1  ;;  %v2025_v0 = vld [vmem:[#allocation12 + $0x30] sm:$0xff] }
 0x8b4   :  { %3277 = vmatprep.subr.bf16.mxu0 %v3615_v51  ;;  %v3284_v54 = vpack.c.bf16 %v2026_v52, %v2025_v0 }
 0x8b7   :  { %3279 = vmatpush3.bf16.msra.mxu0 %v3278_v53 }
 0x8b8   :  { %3280 = vmatprep.subr.bf16.mxu0 %v3615_v51 }
 0x8bb   :  { %3282 = vmatpush3.bf16.msra.mxu0 %v3281_v48 }
 0x8bc   :  { %3283 = vmatprep.subr.bf16.mxu0 %v3615_v51 }
 0x8bf   :  { %3285 = vmatpush3.bf16.msra.mxu0 %v3284_v54 }
 0x8c0   :  { %3286 = vmatprep.subr.bf16.mxu0 %v3615_v51 }
 0x8c3   :  { %3288 = vmatpush3.bf16.msra.mxu0 %v3287_v62 }
 0x8c4   :  { %3289 = vmatprep.subr.bf16.mxu0 %v3615_v51 }
 0x8c7   :  { %3291 = vmatpush3.bf16.msra.mxu0 %v3290_v24 }
 0x8c8   :  { %3292 = vmatprep.subr.bf16.mxu0 %v3615_v51 }
 0x8cb   :  { %3294 = vmatpush3.bf16.msra.mxu0 %v3293_v36 }
 0x8cc   :  { %3295 = vmatprep.subr.bf16.mxu0 %v3615_v51  ;;  %v2168_v51 = vld [vmem:[%s4286_s10] ss:$0 sm:$0xff] }
 0x8cf   :  { %3297 = vmatpush3.bf16.msra.mxu0 %v3296_v2 }
 0x985   :  { %v1922_v45 = vpop.f32.mrb[16].mxu0 }
 0x986   :  { %v1923_v50 = vadd.f32 %v2166_v44, %v1922_v45  ;;  %v2699_v55 = vpop.f32.mrb[17].mxu0 }
 0x988   :  { %2733 = vmatmul.mubr.f32.vlgmr.msra.gmra.mrb[24].mxu1 %v1923_v50 }
 0xa5b   :  { %v2015_v8 = vpop.f32.mrb[24].mxu1 }
 0xa5c   :  { %v2016_v12 = vadd.f32 %v2167_v3, %v2015_v8  ;;  %v2734_v13 = vpop.f32.mrb[25].mxu1 }
 0xa5e   :  { %2768 = vmatmul.mubr.f32.vlgmr.msra.gmra.mrb[18].mxu0 %v2016_v12 }
 0xb31   :  { %v2108_v19 = vpop.f32.mrb[18].mxu0 }
 0xb32   :  { %v2109_v23 = vadd.f32 %v2168_v51, %v2108_v19  ;;  %v2769_v25 = vpop.f32.mrb[19].mxu0 }
 0xb34   :  { %2112 = vst [vmem:[#allocation14] sm:$0xff] %v2109_v23 }
 0xb35   :  { %3583 = shalt.err (!%p3580_p10)
}
 0xb36   :  { %s3584_s2 = scalar_lea.hbm %s4287_s11, 128 }
 0xb37   :  { %p3585_p11 = scmp.ne.s32.totalorder %s4287_s11, %s3584_s2  ;;  %p3588_p12 = scmp.lt.u32.totalorder %s3584_s2, %s4287_s11 }
 0xb39   :  { %p3590_p13 = pnand %p3588_p12, %p3585_p11 }
 0xb3b   :  { %3593 = shalt.err (!%p3590_p13)
}
 0xb3c   :  { %2122 = dma.vmem_to_hbm [thread:$0]  %s2120_s23, 128, %s4287_s11, [#allocation5]  }
 0xb3d   :  { %3602 = dma.done.wait [#allocation5], 128  }
 0xb3e   :  { %3603 = vsyncadd [#allocation5], 4294967168 }
 0xb3f   :  { %2126 = vsyncpa [#allocation4], 1 }
 0xb40   :  { %2127 = vsyncpa [#allocation7], 1 }
 0xb41   :  { %2128 = vsyncpa [#allocation10], 1 }
 0xb42   :  { %2129 = vsyncpa [#allocation13], 1 }
 0xb43   :  { %2130 = vsyncpa [#allocation5], 1 }

</bundles_post_ra>
